<compile_context>
chip_gen: v7x
topology: tpu7x:2x2x1
jax: 0.10.0
libtpu: 0.0.40
codegen_flags: <defaults>
</compile_context>

<pallas_src>
from functools import partial

import jax
import jax.numpy as jnp
from jax.experimental import pallas as pl
from jax.experimental.pallas import tpu as pltpu

LANE = 128  # pad feature (last) dims to the 128-lane vreg width


def _round_up(n, m):
    return ((n + m - 1) // m) * m


def _pad_to(a, shape):
    pads = [(0, t - s) for s, t in zip(a.shape, shape)]
    return jnp.pad(a, pads)


def _choose_batch_tile(batch):
    # Single grid step (block == full batch) unless the batch is large enough
    # that splitting across TensorCores / pipelining the activation DMA pays
    # for the per-step overhead.
    if batch <= 1024:
        return batch
    return 512  # multiple of 8 sublanes


def _bf16_vector_supported():
    """bf16 VPU/EUP exists on v6e and later; v5e (and older) lack it."""
    try:
        kind = jax.devices()[0].device_kind.lower()
    except Exception:
        return False
    return ("v6" in kind) or ("v7" in kind)


def _apply_act(activation, v):
    if activation == "Tanh":
        return jnp.tanh(v)
    if activation == "ReLU":
        return jnp.maximum(v, jnp.zeros_like(v))
    if activation == "Sigmoid":
        return jax.nn.sigmoid(v)
    raise ValueError(f"unknown activation {activation}")


def _mlp_kernel(n_hidden, activation, bf16_hidden,
                x_ref, w_in_ref, b_in_ref, wh_ref, bh_ref,
                w_out_ref, b_out_ref, o_ref):
    """One batch tile of the MLP forward.

    x_ref    : (BM, D_in)             f32   (unpadded lane dim; cast in-kernel)
    w_in_ref : (D_in, H_p)            bf16
    b_in_ref : (1, H_p)               f32
    wh_ref   : (n_hidden, H_p, H_p)   bf16  (stacked hidden-layer weights)
    bh_ref   : (n_hidden, 1, H_p)     f32   (stacked hidden-layer biases)
    w_out_ref: (H_p, Dout_p)          bf16
    b_out_ref: (1, Dout_p)            f32
    o_ref    : (BM, Dout_p)           f32

    Matmuls use bf16 MXU inputs with f32 accumulation.  Bias-add + activation
    run in bf16 on chips with a bf16 VPU/EUP (bf16_hidden=True), else in f32.
    Zero-padded weight rows/cols guarantee padded lanes never reach real
    outputs, so the padding is numerically exact.
    """
    xb = x_ref[...].astype(jnp.bfloat16)  # in-kernel cast; Mosaic pads K internally
    acc = jnp.dot(xb, w_in_ref[...], preferred_element_type=jnp.float32)

    if bf16_hidden:
        # v6e/v7x: bias add + activation in bf16 so `h` feeds the next dot
        # without a separate per-layer pack of a f32 activation.
        h = _apply_act(activation,
                       acc.astype(jnp.bfloat16) + b_in_ref[...].astype(jnp.bfloat16))
        for k in range(n_hidden):  # small compile-time constant -> static unroll
            acc = jnp.dot(h, wh_ref[k], preferred_element_type=jnp.float32)
            h = _apply_act(activation,
                           acc.astype(jnp.bfloat16) + bh_ref[k].astype(jnp.bfloat16))
        h_mx = h  # already bf16
    else:
        # v5e: no bf16 VPU/EUP -> keep bias add + activation in f32.
        h = _apply_act(activation, acc + b_in_ref[...])
        for k in range(n_hidden):
            acc = jnp.dot(h.astype(jnp.bfloat16), wh_ref[k],
                          preferred_element_type=jnp.float32)
            h = _apply_act(activation, acc + bh_ref[k])
        h_mx = h.astype(jnp.bfloat16)

    o_ref[...] = jnp.dot(h_mx, w_out_ref[...],
                         preferred_element_type=jnp.float32) + b_out_ref[...]


def prepare_params(params, n_hidden_layers):
    """One-time: lane-pad hidden/output dims to 128 and cast weights to bf16
    (biases stay f32).  Call once; reuse the result for every forward call."""
    w_in, b_in, wh, bh, w_out, b_out = params
    d_in, h_dim = w_in.shape
    d_out = w_out.shape[1]
    h_p = _round_up(h_dim, LANE)
    d_out_p = _round_up(d_out, LANE)
    return (
        _pad_to(w_in, (d_in, h_p)).astype(jnp.bfloat16),       # K stays unpadded
        _pad_to(b_in, (1, h_p)).astype(jnp.float32),
        _pad_to(wh, (n_hidden_layers, h_p, h_p)).astype(jnp.bfloat16),
        _pad_to(bh, (n_hidden_layers, 1, h_p)).astype(jnp.float32),
        _pad_to(w_out, (h_p, d_out_p)).astype(jnp.bfloat16),
        _pad_to(b_out, (1, d_out_p)).astype(jnp.float32),
    )


@partial(jax.jit, static_argnames=("n_hidden_layers", "activation_function",
                                   "out_dim", "bf16_hidden"))
def neural_net_forward(x, prepared_params, *, n_hidden_layers,
                       activation_function, out_dim, bf16_hidden=False):
    """x: (batch, D_in) f32.  prepared_params: output of prepare_params()."""
    w_in, b_in, wh, bh, w_out, b_out = prepared_params
    batch, d_in = x.shape
    h_p = w_in.shape[1]
    d_out_p = w_out.shape[1]

    bm = _choose_batch_tile(batch)
    batch_p = _round_up(batch, bm)
    if batch_p != batch:  # only when batch > 1024 and not a tile multiple
        x = jnp.pad(x, ((0, batch_p - batch), (0, 0)))
    grid = (batch_p // bm,)

    out_p = pl.pallas_call(
        partial(_mlp_kernel, n_hidden_layers, activation_function, bf16_hidden),
        out_shape=jax.ShapeDtypeStruct((batch_p, d_out_p), jnp.float32),
        grid_spec=pltpu.PrefetchScalarGridSpec(
            num_scalar_prefetch=0,
            grid=grid,
            in_specs=[
                # Activations stream over the batch grid axis (unpadded lane
                # dim == full array dim, which is legal).
                pl.BlockSpec((bm, d_in), lambda i: (i, 0)),
                # Weights / biases stay VMEM-resident (constant block index).
                pl.BlockSpec((d_in, h_p), lambda i: (0, 0)),
                pl.BlockSpec((1, h_p), lambda i: (0, 0)),
                pl.BlockSpec((n_hidden_layers, h_p, h_p), lambda i: (0, 0, 0)),
                pl.BlockSpec((n_hidden_layers, 1, h_p), lambda i: (0, 0, 0)),
                pl.BlockSpec((h_p, d_out_p), lambda i: (0, 0)),
                pl.BlockSpec((1, d_out_p), lambda i: (0, 0)),
            ],
            out_specs=pl.BlockSpec((bm, d_out_p), lambda i: (i, 0)),
        ),
        compiler_params=pltpu.CompilerParams(
            dimension_semantics=("parallel",) if grid[0] > 1 else ("arbitrary",)),
    )(x, w_in, b_in, wh, bh, w_out, b_out)

    return out_p[:batch, :out_dim]


def init_params(key, input_dimension, output_dimension, n_hidden_layers, neurons):
    """Deterministic init mimicking PyTorch nn.Linear default:
    uniform(-1/sqrt(fan_in), +1/sqrt(fan_in)) for weight and bias.
    Weights stored as (in_features, out_features) so y = x @ W + b."""
    keys = jax.random.split(key, 6)

    def unif(k, shape, fan_in):
        bound = 1.0 / jnp.sqrt(jnp.float32(fan_in))
        return jax.random.uniform(k, shape, jnp.float32, -bound, bound)

    w_in = unif(keys[0], (input_dimension, neurons), input_dimension)
    b_in = unif(keys[1], (1, neurons), input_dimension)
    wh = unif(keys[2], (n_hidden_layers, neurons, neurons), neurons)
    bh = unif(keys[3], (n_hidden_layers, 1, neurons), neurons)
    w_out = unif(keys[4], (neurons, output_dimension), neurons)
    b_out = unif(keys[5], (1, output_dimension), neurons)
    return (w_in, b_in, wh, bh, w_out, b_out)


def neural_net_ref(x, params, *, n_hidden_layers, activation_function,
                   matmul_dtype=jnp.float32, act_dtype=jnp.float32):
    """Pure-JAX reference mirroring the PyTorch forward.
    matmul_dtype=bf16 / act_dtype=bf16 reproduce the kernel's reduced-precision
    math; f32/f32 is the PyTorch-equivalent forward."""
    w_in, b_in, wh, bh, w_out, b_out = params

    def act(v):
        return _apply_act(activation_function, v)   # raises on unknown, like the kernel

    def mm(a, w):
        return jnp.dot(a.astype(matmul_dtype), w.astype(matmul_dtype),
                       preferred_element_type=jnp.float32)

    h = act(mm(x, w_in).astype(act_dtype) + b_in.astype(act_dtype))
    for k in range(n_hidden_layers):
        h = act(mm(h, wh[k]).astype(act_dtype) + bh[k].astype(act_dtype))
    return mm(h, w_out) + b_out


if __name__ == "__main__":
    # Shapes consistent with the source script: sample_size=50 time-series
    # window as input features, 2 outputs, a few hidden layers of 32 neurons.
    batch = 256
    input_dimension = 50
    output_dimension = 2
    n_hidden_layers = 3
    neurons = 32
    activation_function = "Tanh"

    key = jax.random.PRNGKey(0)
    kx, kp = jax.random.split(key)
    x = jax.random.normal(kx, (batch, input_dimension), dtype=jnp.float32)
    params = init_params(kp, input_dimension, output_dimension,
                         n_hidden_layers, neurons)

    bf16_hidden = _bf16_vector_supported()

    # One-time preparation (hoisted out of the per-call path).
    prepared = jax.block_until_ready(prepare_params(params, n_hidden_layers))

    out = neural_net_forward(x, prepared,
                             n_hidden_layers=n_hidden_layers,
                             activation_function=activation_function,
                             out_dim=output_dimension,
                             bf16_hidden=bf16_hidden)
    out = jax.block_until_ready(out)
    assert out.shape == (batch, output_dimension)

    # Check against a reference using the same reduced-precision math as the kernel.
    ref_kernel_math = neural_net_ref(
        x, params, n_hidden_layers=n_hidden_layers,
        activation_function=activation_function,
        matmul_dtype=jnp.bfloat16,
        act_dtype=(jnp.bfloat16 if bf16_hidden else jnp.float32))
    assert jnp.allclose(out, ref_kernel_math, atol=1e-2, rtol=1e-2), \
        float(jnp.max(jnp.abs(out - ref_kernel_math)))

    # Loose check against the pure-f32 PyTorch-equivalent forward.
    # NOTE: bf16 MXU inputs (and bf16 activations on v6e/v7x) deviate slightly
    # from PyTorch's f32 forward; this tolerance acknowledges that.
    ref_f32 = neural_net_ref(x, params, n_hidden_layers=n_hidden_layers,
                             activation_function=activation_function,
                             matmul_dtype=jnp.float32, act_dtype=jnp.float32)
    assert jnp.allclose(out, ref_f32, atol=8e-2, rtol=8e-2), \
        float(jnp.max(jnp.abs(out - ref_f32)))

    print("KERNEL_OK")
</pallas_src>

<mosaic_0001>
module attributes {stable_mosaic.version = 11 : i64} {
  func.func @_mlp_kernel(%arg0: i32, %arg1: memref<256x50xf32, #tpu.memory_space<vmem>>, %arg2: memref<50x128xbf16, #tpu.memory_space<vmem>>, %arg3: memref<1x128xf32, #tpu.memory_space<vmem>>, %arg4: memref<3x128x128xbf16, #tpu.memory_space<vmem>>, %arg5: memref<3x1x128xf32, #tpu.memory_space<vmem>>, %arg6: memref<128x128xbf16, #tpu.memory_space<vmem>>, %arg7: memref<1x128xf32, #tpu.memory_space<vmem>>, %arg8: memref<256x128xf32, #tpu.memory_space<vmem>>) attributes {dimension_semantics = [#tpu.dimension_semantics<arbitrary>], iteration_bounds = array<i64: 1>, scalar_prefetch = 0 : i64, scratch_operands = 0 : i64, tpu.core_type = #tpu.core_type<tc>, window_params = [{transform_indices = @transform_0, window_bounds = array<i64: 256, 50>}, {pipeline_mode = #tpu.pipeline_mode<synchronous>, transform_indices = @transform_1, window_bounds = array<i64: 50, 128>}, {pipeline_mode = #tpu.pipeline_mode<synchronous>, transform_indices = @transform_2, window_bounds = array<i64: 1, 128>}, {pipeline_mode = #tpu.pipeline_mode<synchronous>, transform_indices = @transform_3, window_bounds = array<i64: 3, 128, 128>}, {pipeline_mode = #tpu.pipeline_mode<synchronous>, transform_indices = @transform_4, window_bounds = array<i64: 3, 1, 128>}, {pipeline_mode = #tpu.pipeline_mode<synchronous>, transform_indices = @transform_5, window_bounds = array<i64: 128, 128>}, {pipeline_mode = #tpu.pipeline_mode<synchronous>, transform_indices = @transform_6, window_bounds = array<i64: 1, 128>}, {transform_indices = @transform_7, window_bounds = array<i64: 256, 128>}]} {
    %c0 = arith.constant 0 : index
    %c0_0 = arith.constant 0 : index
    %0 = vector.load %arg1[%c0, %c0_0] : memref<256x50xf32, #tpu.memory_space<vmem>>, vector<256x50xf32>
    %1 = arith.truncf %0 : vector<256x50xf32> to vector<256x50xbf16>
    %c0_1 = arith.constant 0 : index
    %c0_2 = arith.constant 0 : index
    %2 = vector.load %arg2[%c0_1, %c0_2] : memref<50x128xbf16, #tpu.memory_space<vmem>>, vector<50x128xbf16>
    %cst = arith.constant dense<0.000000e+00> : vector<256x128xf32>
    %3 = tpu.matmul %1, %2, %cst {dimension_numbers = #tpu.dot_dimension_numbers<[1], [0], [0], [1], [0, 0, 1, 1], [], []>} : vector<256x50xbf16>, vector<50x128xbf16>, vector<256x128xf32> -> vector<256x128xf32>
    %c0_3 = arith.constant 0 : index
    %c0_4 = arith.constant 0 : index
    %4 = vector.load %arg3[%c0_3, %c0_4] : memref<1x128xf32, #tpu.memory_space<vmem>>, vector<1x128xf32>
    %5 = vector.broadcast %4 : vector<1x128xf32> to vector<256x128xf32>
    %6 = arith.addf %3, %5 : vector<256x128xf32>
    %7 = math.tanh %6 : vector<256x128xf32>
    %8 = arith.truncf %7 : vector<256x128xf32> to vector<256x128xbf16>
    %c0_5 = arith.constant 0 : index
    %c0_6 = arith.constant 0 : index
    %c0_7 = arith.constant 0 : index
    %9 = vector.load %arg4[%c0_5, %c0_6, %c0_7] : memref<3x128x128xbf16, #tpu.memory_space<vmem>>, vector<1x128x128xbf16>
    %10 = vector.shape_cast %9 : vector<1x128x128xbf16> to vector<128x128xbf16>
    %cst_8 = arith.constant dense<0.000000e+00> : vector<256x128xf32>
    %11 = tpu.matmul %8, %10, %cst_8 {dimension_numbers = #tpu.dot_dimension_numbers<[1], [0], [0], [1], [0, 0, 1, 1], [], []>} : vector<256x128xbf16>, vector<128x128xbf16>, vector<256x128xf32> -> vector<256x128xf32>
    %c0_9 = arith.constant 0 : index
    %c0_10 = arith.constant 0 : index
    %c0_11 = arith.constant 0 : index
    %12 = vector.load %arg5[%c0_9, %c0_10, %c0_11] : memref<3x1x128xf32, #tpu.memory_space<vmem>>, vector<1x1x128xf32>
    %13 = vector.shape_cast %12 : vector<1x1x128xf32> to vector<1x128xf32>
    %14 = vector.broadcast %13 : vector<1x128xf32> to vector<256x128xf32>
    %15 = arith.addf %11, %14 : vector<256x128xf32>
    %16 = math.tanh %15 : vector<256x128xf32>
    %17 = arith.truncf %16 : vector<256x128xf32> to vector<256x128xbf16>
    %c1 = arith.constant 1 : index
    %c0_12 = arith.constant 0 : index
    %c0_13 = arith.constant 0 : index
    %18 = vector.load %arg4[%c1, %c0_12, %c0_13] : memref<3x128x128xbf16, #tpu.memory_space<vmem>>, vector<1x128x128xbf16>
    %19 = vector.shape_cast %18 : vector<1x128x128xbf16> to vector<128x128xbf16>
    %cst_14 = arith.constant dense<0.000000e+00> : vector<256x128xf32>
    %20 = tpu.matmul %17, %19, %cst_14 {dimension_numbers = #tpu.dot_dimension_numbers<[1], [0], [0], [1], [0, 0, 1, 1], [], []>} : vector<256x128xbf16>, vector<128x128xbf16>, vector<256x128xf32> -> vector<256x128xf32>
    %c1_15 = arith.constant 1 : index
    %c0_16 = arith.constant 0 : index
    %c0_17 = arith.constant 0 : index
    %21 = vector.load %arg5[%c1_15, %c0_16, %c0_17] : memref<3x1x128xf32, #tpu.memory_space<vmem>>, vector<1x1x128xf32>
    %22 = vector.shape_cast %21 : vector<1x1x128xf32> to vector<1x128xf32>
    %23 = vector.broadcast %22 : vector<1x128xf32> to vector<256x128xf32>
    %24 = arith.addf %20, %23 : vector<256x128xf32>
    %25 = math.tanh %24 : vector<256x128xf32>
    %26 = arith.truncf %25 : vector<256x128xf32> to vector<256x128xbf16>
    %c2 = arith.constant 2 : index
    %c0_18 = arith.constant 0 : index
    %c0_19 = arith.constant 0 : index
    %27 = vector.load %arg4[%c2, %c0_18, %c0_19] : memref<3x128x128xbf16, #tpu.memory_space<vmem>>, vector<1x128x128xbf16>
    %28 = vector.shape_cast %27 : vector<1x128x128xbf16> to vector<128x128xbf16>
    %cst_20 = arith.constant dense<0.000000e+00> : vector<256x128xf32>
    %29 = tpu.matmul %26, %28, %cst_20 {dimension_numbers = #tpu.dot_dimension_numbers<[1], [0], [0], [1], [0, 0, 1, 1], [], []>} : vector<256x128xbf16>, vector<128x128xbf16>, vector<256x128xf32> -> vector<256x128xf32>
    %c2_21 = arith.constant 2 : index
    %c0_22 = arith.constant 0 : index
    %c0_23 = arith.constant 0 : index
    %30 = vector.load %arg5[%c2_21, %c0_22, %c0_23] : memref<3x1x128xf32, #tpu.memory_space<vmem>>, vector<1x1x128xf32>
    %31 = vector.shape_cast %30 : vector<1x1x128xf32> to vector<1x128xf32>
    %32 = vector.broadcast %31 : vector<1x128xf32> to vector<256x128xf32>
    %33 = arith.addf %29, %32 : vector<256x128xf32>
    %34 = math.tanh %33 : vector<256x128xf32>
    %35 = arith.truncf %34 : vector<256x128xf32> to vector<256x128xbf16>
    %c0_24 = arith.constant 0 : index
    %c0_25 = arith.constant 0 : index
    %36 = vector.load %arg6[%c0_24, %c0_25] : memref<128x128xbf16, #tpu.memory_space<vmem>>, vector<128x128xbf16>
    %cst_26 = arith.constant dense<0.000000e+00> : vector<256x128xf32>
    %37 = tpu.matmul %35, %36, %cst_26 {dimension_numbers = #tpu.dot_dimension_numbers<[1], [0], [0], [1], [0, 0, 1, 1], [], []>} : vector<256x128xbf16>, vector<128x128xbf16>, vector<256x128xf32> -> vector<256x128xf32>
    %c0_27 = arith.constant 0 : index
    %c0_28 = arith.constant 0 : index
    %38 = vector.load %arg7[%c0_27, %c0_28] : memref<1x128xf32, #tpu.memory_space<vmem>>, vector<1x128xf32>
    %39 = vector.broadcast %38 : vector<1x128xf32> to vector<256x128xf32>
    %40 = arith.addf %37, %39 : vector<256x128xf32>
    %c0_29 = arith.constant 0 : index
    %c0_30 = arith.constant 0 : index
    %41 = vector.load %arg8[%c0_29, %c0_30] : memref<256x128xf32, #tpu.memory_space<vmem>>, vector<256x128xf32>
    tpu.vector_store %arg8[%c0_29, %c0_30], %40 {strides = array<i32>} : memref<256x128xf32, #tpu.memory_space<vmem>>, vector<256x128xf32>,
    return
  }
  func.func @transform_0(%arg0: i32) -> (i32, i32) {
    %c0_i32 = arith.constant 0 : i32
    %c0_i32_0 = arith.constant 0 : i32
    return %arg0, %c0_i32 : i32, i32
  }
  func.func @transform_1(%arg0: i32) -> (i32, i32) {
    %c0_i32 = arith.constant 0 : i32
    %c0_i32_0 = arith.constant 0 : i32
    %c0_i32_1 = arith.constant 0 : i32
    return %c0_i32, %c0_i32_0 : i32, i32
  }
  func.func @transform_2(%arg0: i32) -> (i32, i32) {
    %c0_i32 = arith.constant 0 : i32
    %c0_i32_0 = arith.constant 0 : i32
    %c0_i32_1 = arith.constant 0 : i32
    return %c0_i32, %c0_i32_0 : i32, i32
  }
  func.func @transform_3(%arg0: i32) -> (i32, i32, i32) {
    %c0_i32 = arith.constant 0 : i32
    %c0_i32_0 = arith.constant 0 : i32
    %c0_i32_1 = arith.constant 0 : i32
    %c0_i32_2 = arith.constant 0 : i32
    return %c0_i32, %c0_i32_0, %c0_i32_1 : i32, i32, i32
  }
  func.func @transform_4(%arg0: i32) -> (i32, i32, i32) {
    %c0_i32 = arith.constant 0 : i32
    %c0_i32_0 = arith.constant 0 : i32
    %c0_i32_1 = arith.constant 0 : i32
    %c0_i32_2 = arith.constant 0 : i32
    return %c0_i32, %c0_i32_0, %c0_i32_1 : i32, i32, i32
  }
  func.func @transform_5(%arg0: i32) -> (i32, i32) {
    %c0_i32 = arith.constant 0 : i32
    %c0_i32_0 = arith.constant 0 : i32
    %c0_i32_1 = arith.constant 0 : i32
    return %c0_i32, %c0_i32_0 : i32, i32
  }
  func.func @transform_6(%arg0: i32) -> (i32, i32) {
    %c0_i32 = arith.constant 0 : i32
    %c0_i32_0 = arith.constant 0 : i32
    %c0_i32_1 = arith.constant 0 : i32
    return %c0_i32, %c0_i32_0 : i32, i32
  }
  func.func @transform_7(%arg0: i32) -> (i32, i32) {
    %c0_i32 = arith.constant 0 : i32
    %c0_i32_0 = arith.constant 0 : i32
    return %arg0, %c0_i32 : i32, i32
  }
}

</mosaic_0001>

<bundles_post_ra>
// kernel: neural_net_forward.1
= control target key start
LH: loop header
LB: loop body
LE: loop exit
PB: predicated region body
PF: predicated region fallthrough
CT: control target
= control target key end

     0   :  { %vm110_vm0 = vcmask 408576   ;;  %vm159_vm1 = vcmask 1040384   ;;  %s2790_s1 = inlined_call_operand.vmem [shape: bf16[50,128], index: 1, kind: input, shape index: {}]   ;;  %s2791_s0 = inlined_call_operand.vmem [shape: f32[256,50], index: 0, kind: input, shape index: {}]   ;;  %s2792_s3 = inlined_call_operand.vmem [shape: bf16[3,128,128], index: 3, kind: input, shape index: {}]   ;;  %s2793_s2 = inlined_call_operand.vmem [shape: f32[1,128], index: 2, kind: input, shape index: {}]   ;;  %s2794_s4 = inlined_call_operand.vmem [shape: f32[3,1,128], index: 4, kind: input, shape index: {}]   ;;  %s2795_s5 = inlined_call_operand.vmem [shape: bf16[128,128], index: 5, kind: input, shape index: {}]   ;;  %s2796_s6 = inlined_call_operand.vmem [shape: f32[1,128], index: 6, kind: input, shape index: {}]   ;;  %s2797_s7 = inlined_call_operand.vmem [shape: f32[256,128], index: 7, kind: output, shape index: {}]  }
   0x1   :  { %v1933_v0 = vld [vmem:[%s2790_s1] sm:$0xff]   ;;  %v1934_v1 = vld [vmem:[%s2790_s1 + $0x8] sm:$0xff]   ;;  %v1935_v3 = vld [vmem:[%s2790_s1 + $0x10] sm:$0xff]  }
   0x2   :  { %1691 = vmatprep.subr.bf16.mxu0 %v1933_v0  ;;  %1923 = vmatprep.subr.bf16.mxu1 %v1933_v0  ;;  %v27_v2 = vld [vmem:[%s2791_s0] sm:$0xff]  ;;  %v28_v4 = vld [vmem:[%s2791_s0 + $0x8] sm:$0xff]  ;;  %v1936_v6 = vld [vmem:[%s2790_s1 + $0x18] ss:$0 sps:$4 sm:$0x11]  }
   0x3   :  { %1692 = vmatpush3.bf16.msra.mxu0 %v1933_v0  ;;  %1927 = vmatpush3.bf16.msra.mxu1 %v1933_v0  ;;  %v59_v5 = vpack.c.bf16 %v28_v4, %v27_v2  ;;  %v43_v7 = vld [vmem:[%s2791_s0 + $0x80] sm:$0xff]  ;;  %v44_v8 = vld [vmem:[%s2791_s0 + $0x88] sm:$0xff]  ;;  %v29_v10 = vld [vmem:[%s2791_s0 + $0x10] sm:$0xff]  ;;  %v161_v13 = vsel %vm159_vm1, %v1936_v6, 0 }
   0x4   :  { %1693 = vmatprep.subr.bf16.mxu0 %v1934_v1  ;;  %1924 = vmatprep.subr.bf16.mxu1 %v1934_v1  ;;  %v67_v9 = vpack.c.bf16 %v44_v8, %v43_v7  ;;  %v30_v11 = vld [vmem:[%s2791_s0 + $0x18] sm:$0xff]  ;;  %v31_v12 = vld [vmem:[%s2791_s0 + $0x20] sm:$0xff]  ;;  %v32_v14 = vld [vmem:[%s2791_s0 + $0x28] sm:$0xff] }
   0x5   :  { %1699 = vmatprep.mubr.msk.bf16.mxu0 %vm110_vm0, %v59_v5  ;;  %v45_v15 = vld [vmem:[%s2791_s0 + $0x90] sm:$0xff]  ;;  %v46_v16 = vld [vmem:[%s2791_s0 + $0x98] sm:$0xff]  ;;  %v47_v17 = vld [vmem:[%s2791_s0 + $0xa0] sm:$0xff]  ;;  %v60_v19 = vpack.c.bf16 %v30_v11, %v29_v10  ;;  %v61_v20 = vpack.c.bf16 %v32_v14, %v31_v12 }
   0x6   :  { %1715 = vmatprep.mubr.msk.bf16.mxu1 %vm110_vm0, %v67_v9  ;;  %v48_v18 = vld [vmem:[%s2791_s0 + $0xa8] sm:$0xff]  ;;  %v68_v21 = vpack.c.bf16 %v46_v16, %v45_v15  ;;  %v1937_v22 = vld [vmem:[%s2792_s3] sm:$0xff]   ;;  %v33_v24 = vld [vmem:[%s2791_s0 + $0x30] sm:$0xff] }
   0x7   :  { %1694 = vmatpush3.bf16.msra.mxu0 %v1934_v1  ;;  %1928 = vmatpush3.bf16.msra.mxu1 %v1934_v1  ;;  %v69_v23 = vpack.c.bf16 %v48_v18, %v47_v17  ;;  %v34_v25 = vld [vmem:[%s2791_s0 + $0x38] sm:$0xff]  ;;  %v1938_v26 = vld [vmem:[%s2792_s3 + $0x8] sm:$0xff]   ;;  %v35_v27 = vld [vmem:[%s2791_s0 + $0x40] sm:$0xff] }
   0x8   :  { %1695 = vmatprep.subr.bf16.mxu0 %v1935_v3  ;;  %1925 = vmatprep.subr.bf16.mxu1 %v1935_v3  ;;  %v36_v28 = vld [vmem:[%s2791_s0 + $0x48] sm:$0xff]  ;;  %v49_v29 = vld [vmem:[%s2791_s0 + $0xb0] sm:$0xff]  ;;  %v50_v30 = vld [vmem:[%s2791_s0 + $0xb8] sm:$0xff]  ;;  %v62_v34 = vpack.c.bf16 %v34_v25, %v33_v24 }
   0x9   :  { %v51_v31 = vld [vmem:[%s2791_s0 + $0xc0] sm:$0xff]  ;;  %v52_v32 = vld [vmem:[%s2791_s0 + $0xc8] sm:$0xff]  ;;  %v1939_v33 = vld [vmem:[%s2792_s3 + $0x10] sm:$0xff]   ;;  %v63_v35 = vpack.c.bf16 %v36_v28, %v35_v27  ;;  %v70_v36 = vpack.c.bf16 %v50_v30, %v49_v29 }
   0xa   :  { %v1940_v37 = vld [vmem:[%s2792_s3 + $0x18] sm:$0xff]   ;;  %v71_v38 = vpack.c.bf16 %v52_v32, %v51_v31  ;;  %v37_v39 = vld [vmem:[%s2791_s0 + $0x50] sm:$0xff]  ;;  %v39_v41 = vld [vmem:[%s2791_s0 + $0x60] sm:$0xff] }
   0xb   :  { %1696 = vmatpush3.bf16.msra.mxu0 %v1935_v3  ;;  %1929 = vmatpush3.bf16.msra.mxu1 %v1935_v3  ;;  %v38_v40 = vld [vmem:[%s2791_s0 + $0x58] sm:$0xff]  ;;  %v40_v42 = vld [vmem:[%s2791_s0 + $0x68] sm:$0xff]  ;;  %v53_v43 = vld [vmem:[%s2791_s0 + $0xd0] sm:$0xff] }
   0xc   :  { %1931 = vmatprep.subr.msk.bf16.mxu0 %vm159_vm1, %v1936_v6  ;;  %1932 = vmatprep.subr.msk.bf16.mxu1 %vm159_vm1, %v1936_v6  ;;  %v54_v44 = vld [vmem:[%s2791_s0 + $0xd8] sm:$0xff]  ;;  %v55_v45 = vld [vmem:[%s2791_s0 + $0xe0] sm:$0xff]  ;;  %v56_v46 = vld [vmem:[%s2791_s0 + $0xe8] sm:$0xff]  ;;  %v64_v47 = vpack.c.bf16 %v38_v40, %v37_v39  ;;  %v65_v48 = vpack.c.bf16 %v40_v42, %v39_v41 }
   0xd   :  { %v72_v49 = vpack.c.bf16 %v54_v44, %v53_v43  ;;  %v73_v50 = vpack.c.bf16 %v56_v46, %v55_v45  ;;  %v41_v51 = vld [vmem:[%s2791_s0 + $0x70] sm:$0xff]  ;;  %v42_v52 = vld [vmem:[%s2791_s0 + $0x78] sm:$0xff]  ;;  %v1941_v57 = vld [vmem:[%s2792_s3 + $0x20] sm:$0xff]  }
   0xe   :  { %v57_v53 = vld [vmem:[%s2791_s0 + $0xf0] sm:$0xff]  ;;  %v58_v54 = vld [vmem:[%s2791_s0 + $0xf8] sm:$0xff]  ;;  %v66_v55 = vpack.c.bf16 %v42_v52, %v41_v51  ;;  %v1942_v58 = vld [vmem:[%s2792_s3 + $0x28] sm:$0xff]  }
   0xf   :  { %1698 = vmatpush3.bf16.msra.mxu0 %v161_v13  ;;  %1930 = vmatpush3.bf16.msra.mxu1 %v161_v13  ;;  %v74_v56 = vpack.c.bf16 %v58_v54, %v57_v53  ;;  %v1943_v59 = vld [vmem:[%s2792_s3 + $0x30] sm:$0xff]   ;;  %v1944_v60 = vld [vmem:[%s2792_s3 + $0x38] sm:$0xff]   ;;  %v1945_v61 = vld [vmem:[%s2792_s3 + $0x40] sm:$0xff]  }
  0x10   :  { %1731 = vmatprep.subr.bf16.mxu1 %v1937_v22  ;;  %v1946_v62 = vld [vmem:[%s2792_s3 + $0x48] sm:$0xff]   ;;  %1779 = vmatprep.subr.bf16.mxu0 %v1945_v61  ;;  %v1947_v63 = vld [vmem:[%s2792_s3 + $0x50] sm:$0xff]   ;;  %v1948_v0 = vld [vmem:[%s2792_s3 + $0x58] sm:$0xff]  }
  0x11   :  { %v2431_v1 = vld [vmem:[%s2793_s2] ss:$0 sm:$0xff] }
  0x12   :  { %1700 = vmatmul.mubr.msk.bf16.vlgmr.msra.gmra.mrb[0].mxu0 %vm110_vm0, %v60_v19  ;;  %1716 = vmatmul.mubr.msk.bf16.vlgmr.msra.gmra.mrb[0].mxu1 %vm110_vm0, %v68_v21 }
  0x13   :  { %1703 = vmatprep.mubr.msk.bf16.mxu0 %vm110_vm0, %v61_v20  ;;  %1719 = vmatprep.mubr.msk.bf16.mxu1 %vm110_vm0, %v69_v23 }
  0x14   :  { %1732 = vmatpush3.bf16.msra.mxu1 %v1937_v22  ;;  %1780 = vmatpush3.bf16.msra.mxu0 %v1945_v61 }
  0x15   :  { %1733 = vmatprep.subr.bf16.mxu1 %v1938_v26  ;;  %1781 = vmatprep.subr.bf16.mxu0 %v1946_v62 }
  0x18   :  { %1734 = vmatpush3.bf16.msra.mxu1 %v1938_v26  ;;  %1782 = vmatpush3.bf16.msra.mxu0 %v1946_v62 }
  0x19   :  { %1735 = vmatprep.subr.bf16.mxu1 %v1939_v33  ;;  %1783 = vmatprep.subr.bf16.mxu0 %v1947_v63 }
  0x1a   :  { %1704 = vmatmul.mubr.msk.bf16.gmra.mrb[4].mxu0 %vm110_vm0, %v62_v34  ;;  %1720 = vmatmul.mubr.msk.bf16.gmra.mrb[4].mxu1 %vm110_vm0, %v70_v36 }
  0x1b   :  { %1707 = vmatprep.mubr.msk.bf16.mxu0 %vm110_vm0, %v63_v35  ;;  %1723 = vmatprep.mubr.msk.bf16.mxu1 %vm110_vm0, %v71_v38 }
  0x1c   :  { %1736 = vmatpush3.bf16.msra.mxu1 %v1939_v33  ;;  %1784 = vmatpush3.bf16.msra.mxu0 %v1947_v63 }
  0x1d   :  { %1737 = vmatprep.subr.bf16.mxu1 %v1940_v37  ;;  %1785 = vmatprep.subr.bf16.mxu0 %v1948_v0 }
  0x20   :  { %1738 = vmatpush3.bf16.msra.mxu1 %v1940_v37  ;;  %1786 = vmatpush3.bf16.msra.mxu0 %v1948_v0 }
  0x21   :  { %1739 = vmatprep.subr.bf16.mxu1 %v1941_v57 }
  0x22   :  { %1708 = vmatmul.mubr.msk.bf16.gmra.mrb[8].mxu0 %vm110_vm0, %v64_v47  ;;  %1724 = vmatmul.mubr.msk.bf16.gmra.mrb[8].mxu1 %vm110_vm0, %v72_v49 }
  0x23   :  { %1711 = vmatprep.mubr.msk.bf16.mxu0 %vm110_vm0, %v65_v48  ;;  %1727 = vmatprep.mubr.msk.bf16.mxu1 %vm110_vm0, %v73_v50 }
  0x24   :  { %1740 = vmatpush3.bf16.msra.mxu1 %v1941_v57 }
  0x25   :  { %1741 = vmatprep.subr.bf16.mxu1 %v1942_v58 }
  0x28   :  { %1742 = vmatpush3.bf16.msra.mxu1 %v1942_v58 }
  0x29   :  { %1743 = vmatprep.subr.bf16.mxu1 %v1943_v59 }
  0x2a   :  { %1712 = vmatmul.mubr.msk.bf16.gmra.mrb[12].mxu0 %vm110_vm0, %v66_v55  ;;  %1728 = vmatmul.mubr.msk.bf16.gmra.mrb[12].mxu1 %vm110_vm0, %v74_v56 }
  0x2c   :  { %1744 = vmatpush3.bf16.msra.mxu1 %v1943_v59 }
  0x2d   :  { %1745 = vmatprep.subr.bf16.mxu1 %v1944_v60 }
  0x30   :  { %1746 = vmatpush3.bf16.msra.mxu1 %v1944_v60 }
  0xe5   :  { %v1701_v2 = vpop.f32.mrb[0].mxu0  ;;  %v1717_v5 = vpop.f32.mrb[0].mxu1 }
  0xe6   :  { %v206_v3 = vadd.f32 %v1701_v2, %v2431_v1  ;;  %v197_v4 = vpop.f32.mrb[1].mxu0  ;;  %v261_v8 = vpop.f32.mrb[1].mxu1  ;;  %v270_v11 = vadd.f32 %v1717_v5, %v2431_v1 }
  0xe7   :  { %v198_v6 = vadd.f32 %v2431_v1, %v197_v4  ;;  %v1702_v7 = vpop.f32.mrb[2].mxu0  ;;  %v1718_v12 = vpop.f32.mrb[2].mxu1  ;;  %v262_v14 = vadd.f32 %v2431_v1, %v261_v8 }
  0xe8   :  { %1969 = vtanh.f32 %v206_v3  ;;  %v209_v9 = vadd.f32 %v1702_v7, %v2431_v1  ;;  %v200_v10 = vpop.f32.mrb[3].mxu0  ;;  %v264_v15 = vpop.f32.mrb[3].mxu1  ;;  %v273_v16 = vadd.f32 %v1718_v12, %v2431_v1 }
  0xe9   :  { %1971 = vtanh.f32 %v198_v6  ;;  %v201_v13 = vadd.f32 %v2431_v1, %v200_v10  ;;  %v265_v17 = vadd.f32 %v2431_v1, %v264_v15 }
  0xea   :  { %1973 = vtanh.f32 %v209_v9 }
  0xeb   :  { %1975 = vtanh.f32 %v201_v13 }
  0xec   :  { %1977 = vtanh.f32 %v270_v11 }
  0xed   :  { %v1705_v18 = vpop.f32.mrb[4].mxu0  ;;  %1979 = vtanh.f32 %v262_v14  ;;  %v1721_v21 = vpop.f32.mrb[4].mxu1 }
  0xee   :  { %v222_v19 = vadd.f32 %v1705_v18, %v2431_v1  ;;  %v213_v20 = vpop.f32.mrb[5].mxu0  ;;  %1981 = vtanh.f32 %v273_v16  ;;  %v277_v24 = vpop.f32.mrb[5].mxu1  ;;  %v286_v27 = vadd.f32 %v1721_v21, %v2431_v1 }
  0xef   :  { %v214_v22 = vadd.f32 %v2431_v1, %v213_v20  ;;  %v1706_v23 = vpop.f32.mrb[6].mxu0  ;;  %1983 = vtanh.f32 %v265_v17  ;;  %v1722_v28 = vpop.f32.mrb[6].mxu1  ;;  %v278_v30 = vadd.f32 %v2431_v1, %v277_v24 }
  0xf0   :  { %1985 = vtanh.f32 %v222_v19  ;;  %v225_v25 = vadd.f32 %v1706_v23, %v2431_v1  ;;  %v216_v26 = vpop.f32.mrb[7].mxu0  ;;  %v280_v31 = vpop.f32.mrb[7].mxu1  ;;  %v289_v33 = vadd.f32 %v1722_v28, %v2431_v1 }
  0xf1   :  { %1987 = vtanh.f32 %v214_v22  ;;  %v217_v29 = vadd.f32 %v2431_v1, %v216_v26  ;;  %v281_v35 = vadd.f32 %v2431_v1, %v280_v31 }
  0xf2   :  { %v1970_v32 = vpop.eup %1969  ;;  %1989 = vtanh.f32 %v225_v25 }
  0xf3   :  { %v1972_v34 = vpop.eup %1971  ;;  %1991 = vtanh.f32 %v217_v29 }
  0xf4   :  { %v1974_v36 = vpop.eup %1973  ;;  %1993 = vtanh.f32 %v286_v27 }
  0xf5   :  { %v1976_v37 = vpop.eup %1975  ;;  %v1709_v38 = vpop.f32.mrb[8].mxu0  ;;  %v357_v39 = vpack.c.bf16 %v1974_v36, %v1970_v32  ;;  %1995 = vtanh.f32 %v278_v30 }
  0xf6   :  { %v2449_v40 = vpop.eup %1977  ;;  %v238_v41 = vadd.f32 %v1709_v38, %v2431_v1  ;;  %v229_v42 = vpop.f32.mrb[9].mxu0  ;;  %v356_v43 = vpack.c.bf16 %v1976_v37, %v1972_v34  ;;  %1997 = vtanh.f32 %v289_v33 }
  0xf7   :  { %v1725_v44 = vpop.f32.mrb[8].mxu1  ;;  %v2452_v45 = vpop.eup %1979  ;;  %v230_v46 = vadd.f32 %v2431_v1, %v229_v42  ;;  %1999 = vtanh.f32 %v281_v35 }
  0xf8   :  { %v1710_v47 = vpop.f32.mrb[10].mxu0  ;;  %v293_v48 = vpop.f32.mrb[9].mxu1  ;;  %2001 = vtanh.f32 %v238_v41  ;;  %1747 = vmatprep.mubr.bf16.mxu1 %v356_v43  ;;  %v302_v52 = vadd.f32 %v1725_v44, %v2431_v1 }
  0xf9   :  { %v2455_v49 = vpop.eup %1981  ;;  %v241_v50 = vadd.f32 %v1710_v47, %v2431_v1  ;;  %v232_v51 = vpop.f32.mrb[11].mxu0  ;;  %2003 = vtanh.f32 %v230_v46  ;;  %1748 = vmatmul.mubr.bf16.vlgmr.msra.gmra.mrb[16].mxu1 %v357_v39  ;;  %v294_v56 = vadd.f32 %v2431_v1, %v293_v48 }
  0xfa   :  { %v1726_v53 = vpop.f32.mrb[10].mxu1  ;;  %v2459_v54 = vpop.eup %1983  ;;  %v233_v55 = vadd.f32 %v2431_v1, %v232_v51  ;;  %v365_v58 = vpack.c.bf16 %v2455_v49, %v2449_v40  ;;  %v1951_v40 = vld [vmem:[%s2792_s3 + $0x70] sm:$0xff]   ;;  %v1952_v49 = vld [vmem:[%s2792_s3 + $0x78] sm:$0xff]  }
  0xfb   :  { %v296_v57 = vpop.f32.mrb[11].mxu1  ;;  %v1986_v59 = vpop.eup %1985  ;;  %2005 = vtanh.f32 %v241_v50  ;;  %v305_v60 = vadd.f32 %v1726_v53, %v2431_v1  ;;  %v364_v61 = vpack.c.bf16 %v2459_v54, %v2452_v45  ;;  %v1949_v53 = vld [vmem:[%s2792_s3 + $0x60] sm:$0xff]   ;;  %v1950_v45 = vld [vmem:[%s2792_s3 + $0x68] sm:$0xff]  }
  0xfc   :  { %v1988_v62 = vpop.eup %1987  ;;  %2007 = vtanh.f32 %v233_v55  ;;  %v297_v63 = vadd.f32 %v2431_v1, %v296_v57  ;;  %1787 = vmatprep.subr.bf16.mxu0 %v1949_v53  ;;  %v1953_v54 = vld [vmem:[%s2792_s3 + $0x80] sm:$0xff]   ;;  %v1954_v55 = vld [vmem:[%s2792_s3 + $0x88] sm:$0xff]   ;;  %v1956_v57 = vld [vmem:[%s2792_s3 + $0x98] sm:$0xff]  }
  0xfd   :  { %v1990_v0 = vpop.eup %1989  ;;  %2009 = vtanh.f32 %v302_v52  ;;  %v1713_v3 = vpop.f32.mrb[12].mxu0  ;;  %1788 = vmatpush3.bf16.msra.mxu0 %v1949_v53  ;;  %1827 = vmatprep.subr.bf16.mxu1 %v1953_v54 }
  0xfe   :  { %v1992_v2 = vpop.eup %1991  ;;  %v359_v4 = vpack.c.bf16 %v1990_v0, %v1986_v59  ;;  %2011 = vtanh.f32 %v294_v56  ;;  %v254_v6 = vadd.f32 %v1713_v3, %v2431_v1  ;;  %v245_v7 = vpop.f32.mrb[13].mxu0  ;;  %1789 = vmatprep.subr.bf16.mxu0 %v1950_v45  ;;  %1828 = vmatpush3.bf16.msra.mxu1 %v1953_v54  ;;  %v1955_v56 = vld [vmem:[%s2792_s3 + $0x90] sm:$0xff]   ;;  %v1958_v59 = vld [vmem:[%s2792_s3 + $0xa8] sm:$0xff]  }
  0xff   :  { %v2469_v5 = vpop.eup %1993  ;;  %v358_v8 = vpack.c.bf16 %v1992_v2, %v1988_v62  ;;  %2013 = vtanh.f32 %v305_v60  ;;  %v1729_v9 = vpop.f32.mrb[12].mxu1  ;;  %v246_v11 = vadd.f32 %v2431_v1, %v245_v7  ;;  %1829 = vmatprep.subr.bf16.mxu1 %v1954_v55  ;;  %v2519_v60 = vld [vmem:[%s2794_s4] ss:$0 sm:$0xff] }
 0x100   :  { %v1996_v10 = vpop.eup %1995  ;;  %v1714_v12 = vpop.f32.mrb[14].mxu0  ;;  %2015 = vtanh.f32 %v297_v63  ;;  %v318_v17 = vadd.f32 %v1729_v9, %v2431_v1 }
 0x101   :  { %v309_v13 = vpop.f32.mrb[13].mxu1  ;;  %v1998_v14 = vpop.eup %1997  ;;  %2017 = vtanh.f32 %v254_v6  ;;  %v257_v15 = vadd.f32 %v1714_v12, %v2431_v1  ;;  %1751 = vmatprep.mubr.bf16.mxu1 %v358_v8  ;;  %1790 = vmatpush3.bf16.msra.mxu0 %v1950_v45 }
 0x102   :  { %v248_v16 = vpop.f32.mrb[15].mxu0  ;;  %v1730_v18 = vpop.f32.mrb[14].mxu1  ;;  %2019 = vtanh.f32 %v246_v11  ;;  %1752 = vmatmul.mubr.bf16.gmra.mrb[20].mxu1 %v359_v4  ;;  %v310_v21 = vadd.f32 %v2431_v1, %v309_v13  ;;  %v367_v23 = vpack.c.bf16 %v1998_v14, %v2469_v5  ;;  %1791 = vmatprep.subr.bf16.mxu0 %v1951_v40 }
 0x103   :  { %v2000_v19 = vpop.eup %1999  ;;  %v249_v20 = vadd.f32 %v2431_v1, %v248_v16  ;;  %v312_v22 = vpop.f32.mrb[15].mxu1  ;;  %2021 = vtanh.f32 %v257_v15  ;;  %v321_v25 = vadd.f32 %v1730_v18, %v2431_v1  ;;  %1830 = vmatpush3.bf16.msra.mxu1 %v1954_v55 }
 0x104   :  { %v2002_v24 = vpop.eup %2001  ;;  %v366_v26 = vpack.c.bf16 %v2000_v19, %v1996_v10  ;;  %v313_v28 = vadd.f32 %v2431_v1, %v312_v22  ;;  %1831 = vmatprep.subr.bf16.mxu1 %v1955_v56 }
 0x105   :  { %v2004_v27 = vpop.eup %2003  ;;  %2023 = vtanh.f32 %v249_v20  ;;  %1792 = vmatpush3.bf16.msra.mxu0 %v1951_v40 }
 0x106   :  { %v2006_v29 = vpop.eup %2005  ;;  %2025 = vtanh.f32 %v318_v17  ;;  %1793 = vmatprep.subr.bf16.mxu0 %v1952_v49 }
 0x107   :  { %v2008_v30 = vpop.eup %2007  ;;  %v361_v31 = vpack.c.bf16 %v2006_v29, %v2002_v24  ;;  %2027 = vtanh.f32 %v310_v21  ;;  %1832 = vmatpush3.bf16.msra.mxu1 %v1955_v56 }
 0x108   :  { %v2010_v32 = vpop.eup %2009  ;;  %v360_v33 = vpack.c.bf16 %v2008_v30, %v2004_v27  ;;  %2029 = vtanh.f32 %v321_v25  ;;  %1833 = vmatprep.subr.bf16.mxu1 %v1956_v57 }
 0x109   :  { %v2012_v34 = vpop.eup %2011  ;;  %2031 = vtanh.f32 %v313_v28  ;;  %1794 = vmatpush3.bf16.msra.mxu0 %v1952_v49 }
 0x10a   :  { %v2014_v35 = vpop.eup %2013  ;;  %1755 = vmatprep.mubr.bf16.mxu1 %v360_v33 }
 0x10b   :  { %v2016_v36 = vpop.eup %2015  ;;  %1756 = vmatmul.mubr.bf16.gmra.mrb[24].mxu1 %v361_v31  ;;  %v369_v37 = vpack.c.bf16 %v2014_v35, %v2010_v32 }
 0x10c   :  { %v2018_v38 = vpop.eup %2017  ;;  %v368_v39 = vpack.c.bf16 %v2016_v36, %v2012_v34  ;;  %1834 = vmatpush3.bf16.msra.mxu1 %v1956_v57 }
 0x10d   :  { %v2020_v41 = vpop.eup %2019 }
 0x10e   :  { %v2022_v42 = vpop.eup %2021 }
 0x10f   :  { %v2024_v1 = vpop.eup %2023  ;;  %v363_v43 = vpack.c.bf16 %v2022_v42, %v2018_v38 }
 0x110   :  { %v2026_v44 = vpop.eup %2025  ;;  %v362_v46 = vpack.c.bf16 %v2024_v1, %v2020_v41 }
 0x111   :  { %v2028_v47 = vpop.eup %2027 }
 0x112   :  { %v2030_v48 = vpop.eup %2029  ;;  %1759 = vmatprep.mubr.bf16.mxu1 %v362_v46 }
 0x113   :  { %v2032_v50 = vpop.eup %2031  ;;  %1760 = vmatmul.mubr.bf16.gmra.mrb[28].mxu1 %v363_v43  ;;  %v371_v51 = vpack.c.bf16 %v2030_v48, %v2026_v44 }
 0x114   :  { %1763 = vmatprep.mubr.bf16.mxu1 %v364_v61  ;;  %v370_v52 = vpack.c.bf16 %v2032_v50, %v2028_v47 }
 0x11b   :  { %1764 = vmatmul.mubr.bf16.gmra.mrb[32].mxu1 %v365_v58  ;;  %v1957_v58 = vld [vmem:[%s2792_s3 + $0xa0] sm:$0xff]  }
 0x11c   :  { %1767 = vmatprep.mubr.bf16.mxu1 %v366_v26  ;;  %1835 = vmatprep.subr.bf16.mxu1 %v1957_v58 }
 0x11d   :  { %1836 = vmatpush3.bf16.msra.mxu1 %v1957_v58 }
 0x11e   :  { %1837 = vmatprep.subr.bf16.mxu1 %v1958_v59 }
 0x121   :  { %1838 = vmatpush3.bf16.msra.mxu1 %v1958_v59 }
 0x123   :  { %1768 = vmatmul.mubr.bf16.gmra.mrb[36].mxu1 %v367_v23 }
 0x124   :  { %1771 = vmatprep.mubr.bf16.mxu1 %v368_v39 }
 0x12b   :  { %1772 = vmatmul.mubr.bf16.gmra.mrb[40].mxu1 %v369_v37 }
 0x12c   :  { %1775 = vmatprep.mubr.bf16.mxu1 %v370_v52 }
 0x133   :  { %1776 = vmatmul.mubr.bf16.gmra.mrb[44].mxu1 %v371_v51 }
 0x1cc   :  { %v1749_v61 = vpop.f32.mrb[16].mxu1 }
 0x1cd   :  { %v486_v62 = vadd.f32 %v1749_v61, %v2519_v60  ;;  %v477_v63 = vpop.f32.mrb[17].mxu1 }
 0x1ce   :  { %v478_v0 = vadd.f32 %v2519_v60, %v477_v63  ;;  %v1750_v2 = vpop.f32.mrb[18].mxu1 }
 0x1cf   :  { %2033 = vtanh.f32 %v486_v62  ;;  %v489_v3 = vadd.f32 %v1750_v2, %v2519_v60  ;;  %v480_v4 = vpop.f32.mrb[19].mxu1 }
 0x1d0   :  { %2035 = vtanh.f32 %v478_v0  ;;  %v481_v5 = vadd.f32 %v2519_v60, %v480_v4 }
 0x1d1   :  { %2037 = vtanh.f32 %v489_v3 }
 0x1d2   :  { %2039 = vtanh.f32 %v481_v5 }
 0x1d5   :  { %v1753_v6 = vpop.f32.mrb[20].mxu1 }
 0x1d6   :  { %v502_v7 = vadd.f32 %v1753_v6, %v2519_v60  ;;  %v493_v8 = vpop.f32.mrb[21].mxu1 }
 0x1d7   :  { %v494_v9 = vadd.f32 %v2519_v60, %v493_v8  ;;  %v1754_v10 = vpop.f32.mrb[22].mxu1 }
 0x1d8   :  { %2041 = vtanh.f32 %v502_v7  ;;  %v505_v11 = vadd.f32 %v1754_v10, %v2519_v60  ;;  %v496_v12 = vpop.f32.mrb[23].mxu1 }
 0x1d9   :  { %2043 = vtanh.f32 %v494_v9  ;;  %v497_v13 = vadd.f32 %v2519_v60, %v496_v12  ;;  %v2034_v14 = vpop.eup %2033 }
 0x1da   :  { %2045 = vtanh.f32 %v505_v11  ;;  %v2036_v15 = vpop.eup %2035 }
 0x1db   :  { %2047 = vtanh.f32 %v497_v13  ;;  %v2038_v16 = vpop.eup %2037 }
 0x1dc   :  { %v2040_v17 = vpop.eup %2039  ;;  %v637_v19 = vpack.c.bf16 %v2038_v16, %v2034_v14 }
 0x1dd   :  { %v636_v22 = vpack.c.bf16 %v2040_v17, %v2036_v15 }
 0x1de   :  { %v1757_v18 = vpop.f32.mrb[24].mxu1 }
 0x1df   :  { %v518_v20 = vadd.f32 %v1757_v18, %v2519_v60  ;;  %v509_v21 = vpop.f32.mrb[25].mxu1  ;;  %1795 = vmatprep.mubr.bf16.mxu0 %v636_v22 }
 0x1e0   :  { %v510_v23 = vadd.f32 %v2519_v60, %v509_v21  ;;  %v1758_v24 = vpop.f32.mrb[26].mxu1  ;;  %1796 = vmatmul.mubr.bf16.vlgmr.msra.gmra.mrb[16].mxu0 %v637_v19 }
 0x1e1   :  { %2049 = vtanh.f32 %v518_v20  ;;  %v521_v25 = vadd.f32 %v1758_v24, %v2519_v60  ;;  %v512_v26 = vpop.f32.mrb[27].mxu1 }
 0x1e2   :  { %2051 = vtanh.f32 %v510_v23  ;;  %v513_v27 = vadd.f32 %v2519_v60, %v512_v26  ;;  %v2042_v28 = vpop.eup %2041 }
 0x1e3   :  { %2053 = vtanh.f32 %v521_v25  ;;  %v2044_v29 = vpop.eup %2043 }
 0x1e4   :  { %2055 = vtanh.f32 %v513_v27  ;;  %v2046_v30 = vpop.eup %2045 }
 0x1e5   :  { %v2048_v31 = vpop.eup %2047  ;;  %v639_v33 = vpack.c.bf16 %v2046_v30, %v2042_v28 }
 0x1e6   :  { %v1761_v32 = vpop.f32.mrb[28].mxu1  ;;  %v638_v36 = vpack.c.bf16 %v2048_v31, %v2044_v29 }
 0x1e7   :  { %v534_v34 = vadd.f32 %v1761_v32, %v2519_v60  ;;  %v525_v35 = vpop.f32.mrb[29].mxu1 }
 0x1e8   :  { %v526_v37 = vadd.f32 %v2519_v60, %v525_v35  ;;  %v1762_v38 = vpop.f32.mrb[30].mxu1  ;;  %1799 = vmatprep.mubr.bf16.mxu0 %v638_v36 }
 0x1e9   :  { %2057 = vtanh.f32 %v534_v34  ;;  %v537_v39 = vadd.f32 %v1762_v38, %v2519_v60  ;;  %v528_v41 = vpop.f32.mrb[31].mxu1  ;;  %1800 = vmatmul.mubr.bf16.gmra.mrb[20].mxu0 %v639_v33 }
 0x1ea   :  { %2059 = vtanh.f32 %v526_v37  ;;  %v529_v42 = vadd.f32 %v2519_v60, %v528_v41 }
 0x1eb   :  { %v2050_v1 = vpop.eup %2049  ;;  %2061 = vtanh.f32 %v537_v39 }
 0x1ec   :  { %v2052_v43 = vpop.eup %2051  ;;  %2063 = vtanh.f32 %v529_v42 }
 0x1ed   :  { %v2054_v44 = vpop.eup %2053 }
 0x1ee   :  { %v2056_v46 = vpop.eup %2055  ;;  %v1765_v47 = vpop.f32.mrb[32].mxu1  ;;  %v641_v48 = vpack.c.bf16 %v2054_v44, %v2050_v1 }
 0x1ef   :  { %v550_v50 = vadd.f32 %v1765_v47, %v2519_v60  ;;  %v541_v51 = vpop.f32.mrb[33].mxu1  ;;  %v640_v52 = vpack.c.bf16 %v2056_v46, %v2052_v43 }
 0x1f0   :  { %v542_v53 = vadd.f32 %v2519_v60, %v541_v51  ;;  %v1766_v45 = vpop.f32.mrb[34].mxu1  ;;  %v1962_v51 = vld [vmem:[%s2795_s5 + $0x8] sm:$0xff]  }
 0x1f1   :  { %2065 = vtanh.f32 %v550_v50  ;;  %v553_v40 = vadd.f32 %v1766_v45, %v2519_v60  ;;  %v544_v49 = vpop.f32.mrb[35].mxu1  ;;  %1803 = vmatprep.mubr.bf16.mxu0 %v640_v52  ;;  %v1961_v50 = vld [vmem:[%s2795_s5] sm:$0xff]   ;;  %v1963_v52 = vld [vmem:[%s2795_s5 + $0x10] sm:$0xff]  }
 0x1f2   :  { %2067 = vtanh.f32 %v542_v53  ;;  %v545_v54 = vadd.f32 %v2519_v60, %v544_v49  ;;  %1804 = vmatmul.mubr.bf16.gmra.mrb[24].mxu0 %v641_v48  ;;  %v1960_v48 = vld [vmem:[%s2792_s3 + $0xb8] sm:$0xff]   ;;  %1875 = vmatprep.subr.bf16.mxu0 %v1961_v50  ;;  %v1965_v45 = vld [vmem:[%s2795_s5 + $0x20] sm:$0xff]  }
 0x1f3   :  { %v2058_v55 = vpop.eup %2057  ;;  %2069 = vtanh.f32 %v553_v40  ;;  %1876 = vmatpush3.bf16.msra.mxu0 %v1961_v50  ;;  %v1964_v53 = vld [vmem:[%s2795_s5 + $0x18] sm:$0xff]   ;;  %v1966_v40 = vld [vmem:[%s2795_s5 + $0x28] sm:$0xff]   ;;  %v2580_v49 = vld [vmem:[%s2794_s4 + $0x1] ss:$0 sm:$0xff] }
 0x1f4   :  { %v2060_v56 = vpop.eup %2059  ;;  %2071 = vtanh.f32 %v545_v54  ;;  %1877 = vmatprep.subr.bf16.mxu0 %v1962_v51 }
 0x1f5   :  { %v2062_v57 = vpop.eup %2061 }
 0x1f6   :  { %v2064_v58 = vpop.eup %2063  ;;  %v1769_v59 = vpop.f32.mrb[36].mxu1  ;;  %v643_v61 = vpack.c.bf16 %v2062_v57, %v2058_v55 }
 0x1f7   :  { %v566_v62 = vadd.f32 %v1769_v59, %v2519_v60  ;;  %v557_v63 = vpop.f32.mrb[37].mxu1  ;;  %v642_v0 = vpack.c.bf16 %v2064_v58, %v2060_v56  ;;  %1878 = vmatpush3.bf16.msra.mxu0 %v1962_v51 }
 0x1f8   :  { %v558_v2 = vadd.f32 %v2519_v60, %v557_v63  ;;  %v1770_v3 = vpop.f32.mrb[38].mxu1  ;;  %1879 = vmatprep.subr.bf16.mxu0 %v1963_v52 }
 0x1f9   :  { %2073 = vtanh.f32 %v566_v62  ;;  %v569_v4 = vadd.f32 %v1770_v3, %v2519_v60  ;;  %v560_v5 = vpop.f32.mrb[39].mxu1  ;;  %1807 = vmatprep.mubr.bf16.mxu0 %v642_v0 }
 0x1fa   :  { %2075 = vtanh.f32 %v558_v2  ;;  %v561_v6 = vadd.f32 %v2519_v60, %v560_v5  ;;  %1808 = vmatmul.mubr.bf16.gmra.mrb[28].mxu0 %v643_v61 }
 0x1fb   :  { %v2066_v7 = vpop.eup %2065  ;;  %2077 = vtanh.f32 %v569_v4  ;;  %1880 = vmatpush3.bf16.msra.mxu0 %v1963_v52 }
 0x1fc   :  { %v2068_v8 = vpop.eup %2067  ;;  %2079 = vtanh.f32 %v561_v6  ;;  %1881 = vmatprep.subr.bf16.mxu0 %v1964_v53 }
 0x1fd   :  { %v2070_v9 = vpop.eup %2069 }
 0x1fe   :  { %v2072_v10 = vpop.eup %2071  ;;  %v1773_v11 = vpop.f32.mrb[40].mxu1  ;;  %v645_v12 = vpack.c.bf16 %v2070_v9, %v2066_v7 }
 0x1ff   :  { %v582_v13 = vadd.f32 %v1773_v11, %v2519_v60  ;;  %v573_v14 = vpop.f32.mrb[41].mxu1  ;;  %v644_v15 = vpack.c.bf16 %v2072_v10, %v2068_v8  ;;  %1882 = vmatpush3.bf16.msra.mxu0 %v1964_v53 }
 0x200   :  { %v574_v16 = vadd.f32 %v2519_v60, %v573_v14  ;;  %v1774_v17 = vpop.f32.mrb[42].mxu1  ;;  %1883 = vmatprep.subr.bf16.mxu0 %v1965_v45 }
 0x201   :  { %2081 = vtanh.f32 %v582_v13  ;;  %v585_v18 = vadd.f32 %v1774_v17, %v2519_v60  ;;  %v576_v19 = vpop.f32.mrb[43].mxu1  ;;  %1811 = vmatprep.mubr.bf16.mxu0 %v644_v15 }
 0x202   :  { %2083 = vtanh.f32 %v574_v16  ;;  %v577_v20 = vadd.f32 %v2519_v60, %v576_v19  ;;  %1812 = vmatmul.mubr.bf16.gmra.mrb[32].mxu0 %v645_v12 }
 0x203   :  { %v2074_v21 = vpop.eup %2073  ;;  %2085 = vtanh.f32 %v585_v18  ;;  %1884 = vmatpush3.bf16.msra.mxu0 %v1965_v45 }
 0x204   :  { %v2076_v22 = vpop.eup %2075  ;;  %2087 = vtanh.f32 %v577_v20  ;;  %1885 = vmatprep.subr.bf16.mxu0 %v1966_v40 }
 0x205   :  { %v2078_v23 = vpop.eup %2077 }
 0x206   :  { %v2080_v24 = vpop.eup %2079  ;;  %v1777_v25 = vpop.f32.mrb[44].mxu1  ;;  %v647_v26 = vpack.c.bf16 %v2078_v23, %v2074_v21 }
 0x207   :  { %v598_v27 = vadd.f32 %v1777_v25, %v2519_v60  ;;  %v589_v28 = vpop.f32.mrb[45].mxu1  ;;  %v646_v29 = vpack.c.bf16 %v2080_v24, %v2076_v22  ;;  %1886 = vmatpush3.bf16.msra.mxu0 %v1966_v40 }
 0x208   :  { %v590_v30 = vadd.f32 %v2519_v60, %v589_v28  ;;  %v1778_v31 = vpop.f32.mrb[46].mxu1 }
 0x209   :  { %2089 = vtanh.f32 %v598_v27  ;;  %v601_v32 = vadd.f32 %v1778_v31, %v2519_v60  ;;  %v592_v33 = vpop.f32.mrb[47].mxu1  ;;  %1815 = vmatprep.mubr.bf16.mxu0 %v646_v29 }
 0x20a   :  { %2091 = vtanh.f32 %v590_v30  ;;  %v593_v34 = vadd.f32 %v2519_v60, %v592_v33  ;;  %1816 = vmatmul.mubr.bf16.gmra.mrb[36].mxu0 %v647_v26  ;;  %v1959_v60 = vld [vmem:[%s2792_s3 + $0xb0] sm:$0xff]  }
 0x20b   :  { %v2082_v35 = vpop.eup %2081  ;;  %2093 = vtanh.f32 %v601_v32  ;;  %1839 = vmatprep.subr.bf16.mxu1 %v1959_v60 }
 0x20c   :  { %v2084_v36 = vpop.eup %2083  ;;  %2095 = vtanh.f32 %v593_v34  ;;  %1840 = vmatpush3.bf16.msra.mxu1 %v1959_v60 }
 0x20d   :  { %v2086_v37 = vpop.eup %2085  ;;  %1841 = vmatprep.subr.bf16.mxu1 %v1960_v48 }
 0x20e   :  { %v2088_v38 = vpop.eup %2087  ;;  %v649_v39 = vpack.c.bf16 %v2086_v37, %v2082_v35 }
 0x20f   :  { %v648_v41 = vpack.c.bf16 %v2088_v38, %v2084_v36 }
 0x210   :  { %1842 = vmatpush3.bf16.msra.mxu1 %v1960_v48 }
 0x211   :  { %1819 = vmatprep.mubr.bf16.mxu0 %v648_v41 }
 0x212   :  { %1820 = vmatmul.mubr.bf16.gmra.mrb[40].mxu0 %v649_v39 }
 0x213   :  { %v2090_v42 = vpop.eup %2089 }
 0x214   :  { %v2092_v1 = vpop.eup %2091 }
 0x215   :  { %v2094_v43 = vpop.eup %2093 }
 0x216   :  { %v2096_v44 = vpop.eup %2095  ;;  %v651_v46 = vpack.c.bf16 %v2094_v43, %v2090_v42 }
 0x217   :  { %v650_v47 = vpack.c.bf16 %v2096_v44, %v2092_v1 }
 0x219   :  { %1823 = vmatprep.mubr.bf16.mxu0 %v650_v47 }
 0x21a   :  { %1824 = vmatmul.mubr.bf16.gmra.mrb[44].mxu0 %v651_v46 }
 0x2b3   :  { %v1797_v54 = vpop.f32.mrb[16].mxu0 }
 0x2b4   :  { %v768_v55 = vadd.f32 %v1797_v54, %v2580_v49  ;;  %v759_v56 = vpop.f32.mrb[17].mxu0 }
 0x2b5   :  { %v760_v57 = vadd.f32 %v2580_v49, %v759_v56  ;;  %v1798_v58 = vpop.f32.mrb[18].mxu0 }
 0x2b6   :  { %2097 = vtanh.f32 %v768_v55  ;;  %v771_v59 = vadd.f32 %v1798_v58, %v2580_v49  ;;  %v762_v61 = vpop.f32.mrb[19].mxu0 }
 0x2b7   :  { %2099 = vtanh.f32 %v760_v57  ;;  %v763_v62 = vadd.f32 %v2580_v49, %v762_v61 }
 0x2b8   :  { %2101 = vtanh.f32 %v771_v59 }
 0x2b9   :  { %2103 = vtanh.f32 %v763_v62 }
 0x2bc   :  { %v1801_v63 = vpop.f32.mrb[20].mxu0 }
 0x2bd   :  { %v784_v0 = vadd.f32 %v1801_v63, %v2580_v49  ;;  %v775_v2 = vpop.f32.mrb[21].mxu0 }
 0x2be   :  { %v776_v3 = vadd.f32 %v2580_v49, %v775_v2  ;;  %v1802_v4 = vpop.f32.mrb[22].mxu0 }
 0x2bf   :  { %2105 = vtanh.f32 %v784_v0  ;;  %v787_v5 = vadd.f32 %v1802_v4, %v2580_v49  ;;  %v778_v6 = vpop.f32.mrb[23].mxu0 }
 0x2c0   :  { %2107 = vtanh.f32 %v776_v3  ;;  %v779_v7 = vadd.f32 %v2580_v49, %v778_v6  ;;  %v2098_v8 = vpop.eup %2097 }
 0x2c1   :  { %2109 = vtanh.f32 %v787_v5  ;;  %v2100_v9 = vpop.eup %2099 }
 0x2c2   :  { %2111 = vtanh.f32 %v779_v7  ;;  %v2102_v10 = vpop.eup %2101 }
 0x2c3   :  { %v2104_v11 = vpop.eup %2103  ;;  %v919_v13 = vpack.c.bf16 %v2102_v10, %v2098_v8 }
 0x2c4   :  { %v918_v16 = vpack.c.bf16 %v2104_v11, %v2100_v9 }
 0x2c5   :  { %v1805_v12 = vpop.f32.mrb[24].mxu0 }
 0x2c6   :  { %v800_v14 = vadd.f32 %v1805_v12, %v2580_v49  ;;  %v791_v15 = vpop.f32.mrb[25].mxu0  ;;  %1843 = vmatprep.mubr.bf16.mxu1 %v918_v16 }
 0x2c7   :  { %v792_v17 = vadd.f32 %v2580_v49, %v791_v15  ;;  %v1806_v18 = vpop.f32.mrb[26].mxu0  ;;  %1844 = vmatmul.mubr.bf16.vlgmr.msra.gmra.mrb[48].mxu1 %v919_v13 }
 0x2c8   :  { %2113 = vtanh.f32 %v800_v14  ;;  %v803_v19 = vadd.f32 %v1806_v18, %v2580_v49  ;;  %v794_v20 = vpop.f32.mrb[27].mxu0 }
 0x2c9   :  { %2115 = vtanh.f32 %v792_v17  ;;  %v795_v21 = vadd.f32 %v2580_v49, %v794_v20  ;;  %v2106_v22 = vpop.eup %2105 }
 0x2ca   :  { %2117 = vtanh.f32 %v803_v19  ;;  %v2108_v23 = vpop.eup %2107 }
 0x2cb   :  { %2119 = vtanh.f32 %v795_v21  ;;  %v2110_v24 = vpop.eup %2109 }
 0x2cc   :  { %v2112_v25 = vpop.eup %2111  ;;  %v921_v27 = vpack.c.bf16 %v2110_v24, %v2106_v22 }
 0x2cd   :  { %v1809_v26 = vpop.f32.mrb[28].mxu0  ;;  %v920_v30 = vpack.c.bf16 %v2112_v25, %v2108_v23 }
 0x2ce   :  { %v816_v28 = vadd.f32 %v1809_v26, %v2580_v49  ;;  %v807_v29 = vpop.f32.mrb[29].mxu0 }
 0x2cf   :  { %v808_v31 = vadd.f32 %v2580_v49, %v807_v29  ;;  %v1810_v32 = vpop.f32.mrb[30].mxu0  ;;  %1847 = vmatprep.mubr.bf16.mxu1 %v920_v30 }
 0x2d0   :  { %2121 = vtanh.f32 %v816_v28  ;;  %v819_v33 = vadd.f32 %v1810_v32, %v2580_v49  ;;  %v810_v34 = vpop.f32.mrb[31].mxu0  ;;  %1848 = vmatmul.mubr.bf16.gmra.mrb[52].mxu1 %v921_v27 }
 0x2d1   :  { %2123 = vtanh.f32 %v808_v31  ;;  %v811_v35 = vadd.f32 %v2580_v49, %v810_v34 }
 0x2d2   :  { %v2114_v36 = vpop.eup %2113  ;;  %2125 = vtanh.f32 %v819_v33 }
 0x2d3   :  { %v2116_v37 = vpop.eup %2115  ;;  %2127 = vtanh.f32 %v811_v35 }
 0x2d4   :  { %v2118_v38 = vpop.eup %2117 }
 0x2d5   :  { %v2120_v39 = vpop.eup %2119  ;;  %v1813_v41 = vpop.f32.mrb[32].mxu0  ;;  %v923_v42 = vpack.c.bf16 %v2118_v38, %v2114_v36 }
 0x2d6   :  { %v832_v1 = vadd.f32 %v1813_v41, %v2580_v49  ;;  %v823_v43 = vpop.f32.mrb[33].mxu0  ;;  %v922_v44 = vpack.c.bf16 %v2120_v39, %v2116_v37 }
 0x2d7   :  { %v824_v46 = vadd.f32 %v2580_v49, %v823_v43  ;;  %v1814_v47 = vpop.f32.mrb[34].mxu0 }
 0x2d8   :  { %2129 = vtanh.f32 %v832_v1  ;;  %v835_v60 = vadd.f32 %v1814_v47, %v2580_v49  ;;  %v826_v48 = vpop.f32.mrb[35].mxu0  ;;  %1851 = vmatprep.mubr.bf16.mxu1 %v922_v44  ;;  %v2623_v1 = vld [vmem:[%s2794_s4 + $0x2] ss:$0 sm:$0xff] }
 0x2d9   :  { %2131 = vtanh.f32 %v824_v46  ;;  %v827_v50 = vadd.f32 %v2580_v49, %v826_v48  ;;  %1852 = vmatmul.mubr.bf16.gmra.mrb[56].mxu1 %v923_v42  ;;  %v1968_v42 = vld [vmem:[%s2795_s5 + $0x38] sm:$0xff]  }
 0x2da   :  { %v2122_v51 = vpop.eup %2121  ;;  %2133 = vtanh.f32 %v835_v60 }
 0x2db   :  { %v2124_v52 = vpop.eup %2123  ;;  %2135 = vtanh.f32 %v827_v50 }
 0x2dc   :  { %v2126_v53 = vpop.eup %2125 }
 0x2dd   :  { %v2128_v45 = vpop.eup %2127  ;;  %v1817_v40 = vpop.f32.mrb[36].mxu0  ;;  %v925_v54 = vpack.c.bf16 %v2126_v53, %v2122_v51 }
 0x2de   :  { %v848_v55 = vadd.f32 %v1817_v40, %v2580_v49  ;;  %v839_v56 = vpop.f32.mrb[37].mxu0  ;;  %v924_v57 = vpack.c.bf16 %v2128_v45, %v2124_v52 }
 0x2df   :  { %v840_v58 = vadd.f32 %v2580_v49, %v839_v56  ;;  %v1818_v59 = vpop.f32.mrb[38].mxu0 }
 0x2e0   :  { %2137 = vtanh.f32 %v848_v55  ;;  %v851_v61 = vadd.f32 %v1818_v59, %v2580_v49  ;;  %v842_v62 = vpop.f32.mrb[39].mxu0  ;;  %1855 = vmatprep.mubr.bf16.mxu1 %v924_v57 }
 0x2e1   :  { %2139 = vtanh.f32 %v840_v58  ;;  %v843_v63 = vadd.f32 %v2580_v49, %v842_v62  ;;  %1856 = vmatmul.mubr.bf16.gmra.mrb[60].mxu1 %v925_v54 }
 0x2e2   :  { %v2130_v0 = vpop.eup %2129  ;;  %2141 = vtanh.f32 %v851_v61 }
 0x2e3   :  { %v2132_v2 = vpop.eup %2131  ;;  %2143 = vtanh.f32 %v843_v63 }
 0x2e4   :  { %v2134_v3 = vpop.eup %2133 }
 0x2e5   :  { %v2136_v4 = vpop.eup %2135  ;;  %v1821_v5 = vpop.f32.mrb[40].mxu0  ;;  %v927_v6 = vpack.c.bf16 %v2134_v3, %v2130_v0 }
 0x2e6   :  { %v864_v7 = vadd.f32 %v1821_v5, %v2580_v49  ;;  %v855_v8 = vpop.f32.mrb[41].mxu0  ;;  %v926_v9 = vpack.c.bf16 %v2136_v4, %v2132_v2 }
 0x2e7   :  { %v856_v10 = vadd.f32 %v2580_v49, %v855_v8  ;;  %v1822_v11 = vpop.f32.mrb[42].mxu0 }
 0x2e8   :  { %2145 = vtanh.f32 %v864_v7  ;;  %v867_v12 = vadd.f32 %v1822_v11, %v2580_v49  ;;  %v858_v13 = vpop.f32.mrb[43].mxu0  ;;  %1859 = vmatprep.mubr.bf16.mxu1 %v926_v9 }
 0x2e9   :  { %2147 = vtanh.f32 %v856_v10  ;;  %v859_v14 = vadd.f32 %v2580_v49, %v858_v13  ;;  %1860 = vmatmul.mubr.bf16.gmra.mrb[64].mxu1 %v927_v6 }
 0x2ea   :  { %v2138_v15 = vpop.eup %2137  ;;  %2149 = vtanh.f32 %v867_v12 }
 0x2eb   :  { %v2140_v16 = vpop.eup %2139  ;;  %2151 = vtanh.f32 %v859_v14 }
 0x2ec   :  { %v2142_v17 = vpop.eup %2141 }
 0x2ed   :  { %v2144_v18 = vpop.eup %2143  ;;  %v1825_v19 = vpop.f32.mrb[44].mxu0  ;;  %v929_v20 = vpack.c.bf16 %v2142_v17, %v2138_v15 }
 0x2ee   :  { %v880_v21 = vadd.f32 %v1825_v19, %v2580_v49  ;;  %v871_v22 = vpop.f32.mrb[45].mxu0  ;;  %v928_v23 = vpack.c.bf16 %v2144_v18, %v2140_v16 }
 0x2ef   :  { %v872_v24 = vadd.f32 %v2580_v49, %v871_v22  ;;  %v1826_v25 = vpop.f32.mrb[46].mxu0 }
 0x2f0   :  { %2153 = vtanh.f32 %v880_v21  ;;  %v883_v26 = vadd.f32 %v1826_v25, %v2580_v49  ;;  %v874_v27 = vpop.f32.mrb[47].mxu0  ;;  %1863 = vmatprep.mubr.bf16.mxu1 %v928_v23 }
 0x2f1   :  { %2155 = vtanh.f32 %v872_v24  ;;  %v875_v28 = vadd.f32 %v2580_v49, %v874_v27  ;;  %1864 = vmatmul.mubr.bf16.gmra.mrb[68].mxu1 %v929_v20  ;;  %v1967_v49 = vld [vmem:[%s2795_s5 + $0x30] sm:$0xff]  }
 0x2f2   :  { %v2146_v29 = vpop.eup %2145  ;;  %2157 = vtanh.f32 %v883_v26  ;;  %1887 = vmatprep.subr.bf16.mxu0 %v1967_v49 }
 0x2f3   :  { %v2148_v30 = vpop.eup %2147  ;;  %2159 = vtanh.f32 %v875_v28  ;;  %1888 = vmatpush3.bf16.msra.mxu0 %v1967_v49 }
 0x2f4   :  { %v2150_v31 = vpop.eup %2149  ;;  %1889 = vmatprep.subr.bf16.mxu0 %v1968_v42 }
 0x2f5   :  { %v2152_v32 = vpop.eup %2151  ;;  %v931_v33 = vpack.c.bf16 %v2150_v31, %v2146_v29 }
 0x2f6   :  { %v930_v34 = vpack.c.bf16 %v2152_v32, %v2148_v30 }
 0x2f7   :  { %1890 = vmatpush3.bf16.msra.mxu0 %v1968_v42 }
 0x2f8   :  { %1867 = vmatprep.mubr.bf16.mxu1 %v930_v34 }
 0x2f9   :  { %1868 = vmatmul.mubr.bf16.gmra.mrb[72].mxu1 %v931_v33 }
 0x2fa   :  { %v2154_v35 = vpop.eup %2153 }
 0x2fb   :  { %v2156_v36 = vpop.eup %2155 }
 0x2fc   :  { %v2158_v37 = vpop.eup %2157 }
 0x2fd   :  { %v2160_v38 = vpop.eup %2159  ;;  %v933_v39 = vpack.c.bf16 %v2158_v37, %v2154_v35 }
 0x2fe   :  { %v932_v41 = vpack.c.bf16 %v2160_v38, %v2156_v36 }
 0x300   :  { %1871 = vmatprep.mubr.bf16.mxu1 %v932_v41 }
 0x301   :  { %1872 = vmatmul.mubr.bf16.gmra.mrb[76].mxu1 %v933_v39 }
 0x39a   :  { %v1845_v43 = vpop.f32.mrb[48].mxu1 }
 0x39b   :  { %v1050_v44 = vadd.f32 %v1845_v43, %v2623_v1  ;;  %v1041_v46 = vpop.f32.mrb[49].mxu1 }
 0x39c   :  { %v1042_v47 = vadd.f32 %v2623_v1, %v1041_v46  ;;  %v1846_v60 = vpop.f32.mrb[50].mxu1 }
 0x39d   :  { %2161 = vtanh.f32 %v1050_v44  ;;  %v1053_v48 = vadd.f32 %v1846_v60, %v2623_v1  ;;  %v1044_v50 = vpop.f32.mrb[51].mxu1 }
 0x39e   :  { %2163 = vtanh.f32 %v1042_v47  ;;  %v1045_v51 = vadd.f32 %v2623_v1, %v1044_v50 }
 0x39f   :  { %2165 = vtanh.f32 %v1053_v48 }
 0x3a0   :  { %2167 = vtanh.f32 %v1045_v51 }
 0x3a3   :  { %v1849_v52 = vpop.f32.mrb[52].mxu1 }
 0x3a4   :  { %v1066_v53 = vadd.f32 %v1849_v52, %v2623_v1  ;;  %v1057_v45 = vpop.f32.mrb[53].mxu1 }
 0x3a5   :  { %v1058_v40 = vadd.f32 %v2623_v1, %v1057_v45  ;;  %v1850_v54 = vpop.f32.mrb[54].mxu1 }
 0x3a6   :  { %2169 = vtanh.f32 %v1066_v53  ;;  %v1069_v55 = vadd.f32 %v1850_v54, %v2623_v1  ;;  %v1060_v56 = vpop.f32.mrb[55].mxu1 }
 0x3a7   :  { %2171 = vtanh.f32 %v1058_v40  ;;  %v1061_v57 = vadd.f32 %v2623_v1, %v1060_v56  ;;  %v2162_v58 = vpop.eup %2161 }
 0x3a8   :  { %2173 = vtanh.f32 %v1069_v55  ;;  %v2164_v59 = vpop.eup %2163 }
 0x3a9   :  { %2175 = vtanh.f32 %v1061_v57  ;;  %v2166_v61 = vpop.eup %2165 }
 0x3aa   :  { %v2168_v62 = vpop.eup %2167  ;;  %v1201_v0 = vpack.c.bf16 %v2166_v61, %v2162_v58 }
 0x3ab   :  { %v1200_v4 = vpack.c.bf16 %v2168_v62, %v2164_v59 }
 0x3ac   :  { %v1853_v63 = vpop.f32.mrb[56].mxu1 }
 0x3ad   :  { %v1082_v2 = vadd.f32 %v1853_v63, %v2623_v1  ;;  %v1073_v3 = vpop.f32.mrb[57].mxu1  ;;  %1891 = vmatprep.mubr.bf16.mxu0 %v1200_v4 }
 0x3ae   :  { %v1074_v5 = vadd.f32 %v2623_v1, %v1073_v3  ;;  %v1854_v6 = vpop.f32.mrb[58].mxu1  ;;  %1892 = vmatmul.mubr.bf16.vlgmr.msra.gmra.mrb[48].mxu0 %v1201_v0 }
 0x3af   :  { %2177 = vtanh.f32 %v1082_v2  ;;  %v1085_v7 = vadd.f32 %v1854_v6, %v2623_v1  ;;  %v1076_v8 = vpop.f32.mrb[59].mxu1 }
 0x3b0   :  { %2179 = vtanh.f32 %v1074_v5  ;;  %v1077_v9 = vadd.f32 %v2623_v1, %v1076_v8  ;;  %v2170_v10 = vpop.eup %2169 }
 0x3b1   :  { %2181 = vtanh.f32 %v1085_v7  ;;  %v2172_v11 = vpop.eup %2171 }
 0x3b2   :  { %2183 = vtanh.f32 %v1077_v9  ;;  %v2174_v12 = vpop.eup %2173 }
 0x3b3   :  { %v2176_v13 = vpop.eup %2175  ;;  %v1203_v15 = vpack.c.bf16 %v2174_v12, %v2170_v10 }
 0x3b4   :  { %v1857_v14 = vpop.f32.mrb[60].mxu1  ;;  %v1202_v18 = vpack.c.bf16 %v2176_v13, %v2172_v11 }
 0x3b5   :  { %v1098_v16 = vadd.f32 %v1857_v14, %v2623_v1  ;;  %v1089_v17 = vpop.f32.mrb[61].mxu1 }
 0x3b6   :  { %v1090_v19 = vadd.f32 %v2623_v1, %v1089_v17  ;;  %v1858_v20 = vpop.f32.mrb[62].mxu1  ;;  %1895 = vmatprep.mubr.bf16.mxu0 %v1202_v18 }
 0x3b7   :  { %2185 = vtanh.f32 %v1098_v16  ;;  %v1101_v21 = vadd.f32 %v1858_v20, %v2623_v1  ;;  %v1092_v22 = vpop.f32.mrb[63].mxu1  ;;  %1896 = vmatmul.mubr.bf16.gmra.mrb[52].mxu0 %v1203_v15 }
 0x3b8   :  { %2187 = vtanh.f32 %v1090_v19  ;;  %v1093_v23 = vadd.f32 %v2623_v1, %v1092_v22 }
 0x3b9   :  { %v2178_v24 = vpop.eup %2177  ;;  %2189 = vtanh.f32 %v1101_v21 }
 0x3ba   :  { %v2180_v25 = vpop.eup %2179  ;;  %2191 = vtanh.f32 %v1093_v23 }
 0x3bb   :  { %v2182_v26 = vpop.eup %2181 }
 0x3bc   :  { %v2184_v27 = vpop.eup %2183  ;;  %v1861_v28 = vpop.f32.mrb[64].mxu1  ;;  %v1205_v29 = vpack.c.bf16 %v2182_v26, %v2178_v24 }
 0x3bd   :  { %v1114_v30 = vadd.f32 %v1861_v28, %v2623_v1  ;;  %v1105_v31 = vpop.f32.mrb[65].mxu1  ;;  %v1204_v32 = vpack.c.bf16 %v2184_v27, %v2180_v25 }
 0x3be   :  { %v1106_v33 = vadd.f32 %v2623_v1, %v1105_v31  ;;  %v1862_v34 = vpop.f32.mrb[66].mxu1 }
 0x3bf   :  { %2193 = vtanh.f32 %v1114_v30  ;;  %v1117_v35 = vadd.f32 %v1862_v34, %v2623_v1  ;;  %v1108_v36 = vpop.f32.mrb[67].mxu1  ;;  %1899 = vmatprep.mubr.bf16.mxu0 %v1204_v32 }
 0x3c0   :  { %2195 = vtanh.f32 %v1106_v33  ;;  %v1109_v37 = vadd.f32 %v2623_v1, %v1108_v36  ;;  %1900 = vmatmul.mubr.bf16.gmra.mrb[56].mxu0 %v1205_v29 }
 0x3c1   :  { %v2186_v38 = vpop.eup %2185  ;;  %2197 = vtanh.f32 %v1117_v35 }
 0x3c2   :  { %v2188_v39 = vpop.eup %2187  ;;  %2199 = vtanh.f32 %v1109_v37 }
 0x3c3   :  { %v2190_v41 = vpop.eup %2189 }
 0x3c4   :  { %v2192_v49 = vpop.eup %2191  ;;  %v1865_v42 = vpop.f32.mrb[68].mxu1  ;;  %v1207_v43 = vpack.c.bf16 %v2190_v41, %v2186_v38 }
 0x3c5   :  { %v1130_v44 = vadd.f32 %v1865_v42, %v2623_v1  ;;  %v1121_v46 = vpop.f32.mrb[69].mxu1  ;;  %v1206_v47 = vpack.c.bf16 %v2192_v49, %v2188_v39 }
 0x3c6   :  { %v1122_v60 = vadd.f32 %v2623_v1, %v1121_v46  ;;  %v1866_v48 = vpop.f32.mrb[70].mxu1 }
 0x3c7   :  { %2201 = vtanh.f32 %v1130_v44  ;;  %v1133_v50 = vadd.f32 %v1866_v48, %v2623_v1  ;;  %v1124_v51 = vpop.f32.mrb[71].mxu1  ;;  %1903 = vmatprep.mubr.bf16.mxu0 %v1206_v47 }
 0x3c8   :  { %2203 = vtanh.f32 %v1122_v60  ;;  %v1125_v52 = vadd.f32 %v2623_v1, %v1124_v51  ;;  %1904 = vmatmul.mubr.bf16.gmra.mrb[60].mxu0 %v1207_v43 }
 0x3c9   :  { %v2194_v53 = vpop.eup %2193  ;;  %2205 = vtanh.f32 %v1133_v50 }
 0x3ca   :  { %v2196_v45 = vpop.eup %2195  ;;  %2207 = vtanh.f32 %v1125_v52 }
 0x3cb   :  { %v2198_v40 = vpop.eup %2197 }
 0x3cc   :  { %v2200_v54 = vpop.eup %2199  ;;  %v1869_v55 = vpop.f32.mrb[72].mxu1  ;;  %v1209_v56 = vpack.c.bf16 %v2198_v40, %v2194_v53 }
 0x3cd   :  { %v1146_v57 = vadd.f32 %v1869_v55, %v2623_v1  ;;  %v1137_v58 = vpop.f32.mrb[73].mxu1  ;;  %v1208_v59 = vpack.c.bf16 %v2200_v54, %v2196_v45 }
 0x3ce   :  { %v1138_v61 = vadd.f32 %v2623_v1, %v1137_v58  ;;  %v1870_v62 = vpop.f32.mrb[74].mxu1 }
 0x3cf   :  { %2209 = vtanh.f32 %v1146_v57  ;;  %v1149_v63 = vadd.f32 %v1870_v62, %v2623_v1  ;;  %v1140_v0 = vpop.f32.mrb[75].mxu1  ;;  %1907 = vmatprep.mubr.bf16.mxu0 %v1208_v59 }
 0x3d0   :  { %2211 = vtanh.f32 %v1138_v61  ;;  %v1141_v2 = vadd.f32 %v2623_v1, %v1140_v0  ;;  %1908 = vmatmul.mubr.bf16.gmra.mrb[64].mxu0 %v1209_v56 }
 0x3d1   :  { %v2202_v3 = vpop.eup %2201  ;;  %2213 = vtanh.f32 %v1149_v63 }
 0x3d2   :  { %v2204_v4 = vpop.eup %2203  ;;  %2215 = vtanh.f32 %v1141_v2 }
 0x3d3   :  { %v2206_v5 = vpop.eup %2205 }
 0x3d4   :  { %v2208_v6 = vpop.eup %2207  ;;  %v1873_v7 = vpop.f32.mrb[76].mxu1  ;;  %v1211_v8 = vpack.c.bf16 %v2206_v5, %v2202_v3 }
 0x3d5   :  { %v1162_v9 = vadd.f32 %v1873_v7, %v2623_v1  ;;  %v1153_v10 = vpop.f32.mrb[77].mxu1  ;;  %v1210_v11 = vpack.c.bf16 %v2208_v6, %v2204_v4 }
 0x3d6   :  { %v1154_v12 = vadd.f32 %v2623_v1, %v1153_v10  ;;  %v1874_v13 = vpop.f32.mrb[78].mxu1 }
 0x3d7   :  { %2217 = vtanh.f32 %v1162_v9  ;;  %v1165_v14 = vadd.f32 %v1874_v13, %v2623_v1  ;;  %v1156_v15 = vpop.f32.mrb[79].mxu1  ;;  %1911 = vmatprep.mubr.bf16.mxu0 %v1210_v11 }
 0x3d8   :  { %2219 = vtanh.f32 %v1154_v12  ;;  %v1157_v16 = vadd.f32 %v2623_v1, %v1156_v15  ;;  %1912 = vmatmul.mubr.bf16.gmra.mrb[68].mxu0 %v1211_v8  ;;  %v2660_v1 = vld [vmem:[%s2796_s6] ss:$0 sm:$0xff] }
 0x3d9   :  { %v2210_v17 = vpop.eup %2209  ;;  %2221 = vtanh.f32 %v1165_v14 }
 0x3da   :  { %v2212_v18 = vpop.eup %2211  ;;  %2223 = vtanh.f32 %v1157_v16 }
 0x3db   :  { %v2214_v19 = vpop.eup %2213 }
 0x3dc   :  { %v2216_v20 = vpop.eup %2215  ;;  %v1213_v21 = vpack.c.bf16 %v2214_v19, %v2210_v17 }
 0x3dd   :  { %v1212_v22 = vpack.c.bf16 %v2216_v20, %v2212_v18 }
 0x3df   :  { %1915 = vmatprep.mubr.bf16.mxu0 %v1212_v22 }
 0x3e0   :  { %1916 = vmatmul.mubr.bf16.gmra.mrb[72].mxu0 %v1213_v21 }
 0x3e1   :  { %v2218_v23 = vpop.eup %2217 }
 0x3e2   :  { %v2220_v24 = vpop.eup %2219 }
 0x3e3   :  { %v2222_v25 = vpop.eup %2221 }
 0x3e4   :  { %v2224_v26 = vpop.eup %2223  ;;  %v1215_v27 = vpack.c.bf16 %v2222_v25, %v2218_v23 }
 0x3e5   :  { %v1214_v28 = vpack.c.bf16 %v2224_v26, %v2220_v24 }
 0x3e7   :  { %1919 = vmatprep.mubr.bf16.mxu0 %v1214_v28 }
 0x3e8   :  { %1920 = vmatmul.mubr.bf16.gmra.mrb[76].mxu0 %v1215_v27 }
 0x481   :  { %v1893_v29 = vpop.f32.mrb[48].mxu0 }
 0x482   :  { %v1330_v30 = vadd.f32 %v1893_v29, %v2660_v1  ;;  %v1321_v31 = vpop.f32.mrb[49].mxu0 }
 0x483   :  { %v1322_v32 = vadd.f32 %v2660_v1, %v1321_v31  ;;  %v1894_v33 = vpop.f32.mrb[50].mxu0 }
 0x484   :  { %1450 = vst [vmem:[%s2797_s7 + $0x10] sm:$0xff] %v1330_v30  ;;  %v1333_v34 = vadd.f32 %v1894_v33, %v2660_v1  ;;  %v1324_v35 = vpop.f32.mrb[51].mxu0 }
 0x485   :  { %1448 = vst [vmem:[%s2797_s7] sm:$0xff] %v1322_v32  ;;  %v1325_v36 = vadd.f32 %v2660_v1, %v1324_v35 }
 0x486   :  { %1451 = vst [vmem:[%s2797_s7 + $0x18] sm:$0xff] %v1333_v34 }
 0x487   :  { %1449 = vst [vmem:[%s2797_s7 + $0x8] sm:$0xff] %v1325_v36 }
 0x48a   :  { %v1897_v37 = vpop.f32.mrb[52].mxu0 }
 0x48b   :  { %v1346_v38 = vadd.f32 %v1897_v37, %v2660_v1  ;;  %v1337_v39 = vpop.f32.mrb[53].mxu0 }
 0x48c   :  { %v1338_v41 = vadd.f32 %v2660_v1, %v1337_v39  ;;  %v1898_v49 = vpop.f32.mrb[54].mxu0 }
 0x48d   :  { %1454 = vst [vmem:[%s2797_s7 + $0x30] sm:$0xff] %v1346_v38  ;;  %v1349_v42 = vadd.f32 %v1898_v49, %v2660_v1  ;;  %v1340_v43 = vpop.f32.mrb[55].mxu0 }
 0x48e   :  { %1452 = vst [vmem:[%s2797_s7 + $0x20] sm:$0xff] %v1338_v41  ;;  %v1341_v44 = vadd.f32 %v2660_v1, %v1340_v43 }
 0x48f   :  { %1455 = vst [vmem:[%s2797_s7 + $0x38] sm:$0xff] %v1349_v42 }
 0x490   :  { %1453 = vst [vmem:[%s2797_s7 + $0x28] sm:$0xff] %v1341_v44 }
 0x493   :  { %v1901_v46 = vpop.f32.mrb[56].mxu0 }
 0x494   :  { %v1362_v47 = vadd.f32 %v1901_v46, %v2660_v1  ;;  %v1353_v60 = vpop.f32.mrb[57].mxu0 }
 0x495   :  { %v1354_v48 = vadd.f32 %v2660_v1, %v1353_v60  ;;  %v1902_v50 = vpop.f32.mrb[58].mxu0 }
 0x496   :  { %1458 = vst [vmem:[%s2797_s7 + $0x50] sm:$0xff] %v1362_v47  ;;  %v1365_v51 = vadd.f32 %v1902_v50, %v2660_v1  ;;  %v1356_v52 = vpop.f32.mrb[59].mxu0 }
 0x497   :  { %1456 = vst [vmem:[%s2797_s7 + $0x40] sm:$0xff] %v1354_v48  ;;  %v1357_v53 = vadd.f32 %v2660_v1, %v1356_v52 }
 0x498   :  { %1459 = vst [vmem:[%s2797_s7 + $0x58] sm:$0xff] %v1365_v51 }
 0x499   :  { %1457 = vst [vmem:[%s2797_s7 + $0x48] sm:$0xff] %v1357_v53 }
 0x49b   :  { %v1905_v45 = vpop.f32.mrb[60].mxu0 }
 0x49c   :  { %v1378_v40 = vadd.f32 %v1905_v45, %v2660_v1  ;;  %v1369_v54 = vpop.f32.mrb[61].mxu0 }
 0x49d   :  { %v1370_v55 = vadd.f32 %v2660_v1, %v1369_v54  ;;  %v1906_v56 = vpop.f32.mrb[62].mxu0 }
 0x49e   :  { %1462 = vst [vmem:[%s2797_s7 + $0x70] sm:$0xff] %v1378_v40  ;;  %v1381_v57 = vadd.f32 %v1906_v56, %v2660_v1  ;;  %v1372_v58 = vpop.f32.mrb[63].mxu0 }
 0x49f   :  { %1460 = vst [vmem:[%s2797_s7 + $0x60] sm:$0xff] %v1370_v55  ;;  %v1373_v59 = vadd.f32 %v2660_v1, %v1372_v58 }
 0x4a0   :  { %1463 = vst [vmem:[%s2797_s7 + $0x78] sm:$0xff] %v1381_v57 }
 0x4a1   :  { %1461 = vst [vmem:[%s2797_s7 + $0x68] sm:$0xff] %v1373_v59 }
 0x4a3   :  { %v1909_v61 = vpop.f32.mrb[64].mxu0 }
 0x4a4   :  { %v1394_v62 = vadd.f32 %v1909_v61, %v2660_v1  ;;  %v1385_v63 = vpop.f32.mrb[65].mxu0 }
 0x4a5   :  { %v1386_v0 = vadd.f32 %v2660_v1, %v1385_v63  ;;  %v1910_v2 = vpop.f32.mrb[66].mxu0 }
 0x4a6   :  { %1466 = vst [vmem:[%s2797_s7 + $0x90] sm:$0xff] %v1394_v62  ;;  %v1397_v3 = vadd.f32 %v1910_v2, %v2660_v1  ;;  %v1388_v4 = vpop.f32.mrb[67].mxu0 }
 0x4a7   :  { %1464 = vst [vmem:[%s2797_s7 + $0x80] sm:$0xff] %v1386_v0  ;;  %v1389_v5 = vadd.f32 %v2660_v1, %v1388_v4 }
 0x4a8   :  { %1467 = vst [vmem:[%s2797_s7 + $0x98] sm:$0xff] %v1397_v3 }
 0x4a9   :  { %1465 = vst [vmem:[%s2797_s7 + $0x88] sm:$0xff] %v1389_v5 }
 0x4ab   :  { %v1913_v6 = vpop.f32.mrb[68].mxu0 }
 0x4ac   :  { %v1410_v7 = vadd.f32 %v1913_v6, %v2660_v1  ;;  %v1401_v8 = vpop.f32.mrb[69].mxu0 }
 0x4ad   :  { %v1402_v9 = vadd.f32 %v2660_v1, %v1401_v8  ;;  %v1914_v10 = vpop.f32.mrb[70].mxu0 }
 0x4ae   :  { %1470 = vst [vmem:[%s2797_s7 + $0xb0] sm:$0xff] %v1410_v7  ;;  %v1413_v11 = vadd.f32 %v1914_v10, %v2660_v1  ;;  %v1404_v12 = vpop.f32.mrb[71].mxu0 }
 0x4af   :  { %1468 = vst [vmem:[%s2797_s7 + $0xa0] sm:$0xff] %v1402_v9  ;;  %v1405_v13 = vadd.f32 %v2660_v1, %v1404_v12 }
 0x4b0   :  { %1471 = vst [vmem:[%s2797_s7 + $0xb8] sm:$0xff] %v1413_v11 }
 0x4b1   :  { %1469 = vst [vmem:[%s2797_s7 + $0xa8] sm:$0xff] %v1405_v13 }
 0x4b3   :  { %v1917_v14 = vpop.f32.mrb[72].mxu0 }
 0x4b4   :  { %v1426_v15 = vadd.f32 %v1917_v14, %v2660_v1  ;;  %v1417_v16 = vpop.f32.mrb[73].mxu0 }
 0x4b5   :  { %v1418_v17 = vadd.f32 %v2660_v1, %v1417_v16  ;;  %v1918_v18 = vpop.f32.mrb[74].mxu0 }
 0x4b6   :  { %1474 = vst [vmem:[%s2797_s7 + $0xd0] sm:$0xff] %v1426_v15  ;;  %v1429_v19 = vadd.f32 %v1918_v18, %v2660_v1  ;;  %v1420_v20 = vpop.f32.mrb[75].mxu0 }
 0x4b7   :  { %1472 = vst [vmem:[%s2797_s7 + $0xc0] sm:$0xff] %v1418_v17  ;;  %v1421_v21 = vadd.f32 %v2660_v1, %v1420_v20 }
 0x4b8   :  { %1475 = vst [vmem:[%s2797_s7 + $0xd8] sm:$0xff] %v1429_v19 }
 0x4b9   :  { %1473 = vst [vmem:[%s2797_s7 + $0xc8] sm:$0xff] %v1421_v21 }
 0x4bb   :  { %v1921_v22 = vpop.f32.mrb[76].mxu0 }
 0x4bc   :  { %v1442_v23 = vadd.f32 %v1921_v22, %v2660_v1  ;;  %v1433_v24 = vpop.f32.mrb[77].mxu0 }
 0x4bd   :  { %v1434_v25 = vadd.f32 %v2660_v1, %v1433_v24  ;;  %v1922_v26 = vpop.f32.mrb[78].mxu0 }
 0x4be   :  { %1478 = vst [vmem:[%s2797_s7 + $0xf0] sm:$0xff] %v1442_v23  ;;  %v1445_v27 = vadd.f32 %v1922_v26, %v2660_v1  ;;  %v1436_v28 = vpop.f32.mrb[79].mxu0 }
 0x4bf   :  { %1476 = vst [vmem:[%s2797_s7 + $0xe0] sm:$0xff] %v1434_v25  ;;  %v1437_v29 = vadd.f32 %v2660_v1, %v1436_v28 }
 0x4c0   :  { %1479 = vst [vmem:[%s2797_s7 + $0xf8] sm:$0xff] %v1445_v27 }
 0x4c1   :  { %1477 = vst [vmem:[%s2797_s7 + $0xe8] sm:$0xff] %v1437_v29 }

</bundles_post_ra>
